<compile_context>
chip_gen: v7x
topology: tpu7x:2x2x1
jax: 0.10.0
libtpu: 0.0.40
codegen_flags: <defaults>
</compile_context>

<pallas_src>
import functools

import jax
import jax.numpy as jnp
from jax.experimental import pallas as pl
from jax.experimental.pallas import tpu as pltpu

LANE = 128


def _round_up(n, m):
    return ((n + m - 1) // m) * m


# ---------------------------------------------------------------------------
# Fused Pallas kernel: conv1..conv3 (+ReLU) and the fused three-head projection.
# a_ref      : [Np, Np]      bf16  exact 0/1 (edge-count) adjacency, row = dst, col = src
# invdeg_ref : [Np, 1]       f32   1 / in-degree (0 for isolated / padded rows)
# x_ref      : [Np, 128]     bf16  lane-padded node features
# w_ref      : [4, 256, 128] bf16  per layer: rows 0..127 = W_l, rows 128..255 = W_r
# b_ref      : [4, 1, 128]   f32   per layer bias
# o_ref      : [Np, 128]     f32   lane-dense fused-head output [age | sex | eth | pad]
# ---------------------------------------------------------------------------
def _fused_gnn_kernel(a_ref, invdeg_ref, x_ref, w_ref, b_ref, o_ref):
    a = a_ref[...]                       # [Np, Np] bf16 (exact small integers)
    inv_deg = invdeg_ref[...]            # [Np, 1]  f32
    x = x_ref[...]                       # [Np, C]  bf16
    num_layers = w_ref.shape[0]          # 4 (static, loop is unrolled)

    for l in range(num_layers):
        # mean aggregation: exact 0/1 matmul with f32 accumulation, then f32 1/deg scale.
        agg = jnp.dot(a, x, preferred_element_type=jnp.float32) * inv_deg       # [Np, C] f32
        # fused root + neighbor projection: one K=2C matmul against stacked [W_l ; W_r].
        cat = jnp.concatenate([agg.astype(jnp.bfloat16), x], axis=-1)           # [Np, 2C] bf16
        out = jnp.dot(cat, w_ref[l], preferred_element_type=jnp.float32) + b_ref[l]
        if l < num_layers - 1:
            x = jnp.maximum(out, 0.0).astype(jnp.bfloat16)                      # ReLU -> next layer
        else:
            o_ref[...] = out.astype(o_ref.dtype)                                # heads: no ReLU


def _fused_gnn_call(adj01, inv_deg, x_pad, w_stack, b_stack):
    n_pad, c_pad = x_pad.shape
    vmem = pl.BlockSpec(memory_space=pltpu.MemorySpace.VMEM)

    # FLOPs: per layer one [Np,Np]x[Np,C] matmul + one [Np,2C]x[2C,C] matmul.
    flops = 4 * (2 * n_pad * n_pad * c_pad + 2 * n_pad * (2 * c_pad) * c_pad)
    # Bytes: each operand counted exactly once, in its actual dtype.
    bytes_accessed = (adj01.size * 2 + inv_deg.size * 4 + x_pad.size * 2
                      + w_stack.size * 2 + b_stack.size * 4
                      + n_pad * c_pad * 4)                       # output

    # Scoped-VMEM budget: resident operands (double-buffer headroom) + activations.
    resident = (adj01.size * 2 + x_pad.size * 2 + w_stack.size * 2
                + b_stack.size * 4 + n_pad * LANE * 4            # inv_deg (lane-padded)
                + n_pad * c_pad * 4)                             # output
    activations = 6 * n_pad * c_pad * 4                          # agg/cat/out intermediates
    need = 2 * resident + activations + (4 << 20)
    vmem_limit = int(min(max(need, 32 << 20), 64 << 20))         # <=64 MiB: legal on v7x too

    return pl.pallas_call(
        _fused_gnn_kernel,
        out_shape=jax.ShapeDtypeStruct((n_pad, c_pad), jnp.float32),
        in_specs=[vmem] * 5,
        out_specs=vmem,
        compiler_params=pltpu.CompilerParams(vmem_limit_bytes=vmem_limit),
        cost_estimate=pl.CostEstimate(flops=flops, transcendentals=0,
                                      bytes_accessed=bytes_accessed),
    )(adj01, inv_deg, x_pad, w_stack, b_stack)


# ---------------------------------------------------------------------------
# Glue: padded 0/1 adjacency + f32 inverse in-degree, built ONCE (outside the
# per-forward jit path).  edge_index: int32 [2, E], messages flow [0] -> [1].
# ---------------------------------------------------------------------------
def build_padded_graph(edge_index, n_pad):
    src, dst = edge_index[0], edge_index[1]
    adj01 = jnp.zeros((n_pad, n_pad), jnp.float32).at[dst, src].add(1.0)  # edge counts (exact in bf16)
    deg = adj01.sum(axis=1, keepdims=True)
    inv_deg = jnp.where(deg > 0.0, 1.0 / jnp.where(deg > 0.0, deg, 1.0), 0.0)  # [n_pad, 1] f32
    return adj01.astype(jnp.bfloat16), inv_deg


def pad_features(x, n_pad, c_pad):
    x_pad = jnp.zeros((n_pad, c_pad), jnp.float32).at[:x.shape[0], :x.shape[1]].set(x)
    return x_pad.astype(jnp.bfloat16)


# ---------------------------------------------------------------------------
# Parameters (natural shapes) + one-time stacking/padding into kernel layout.
# ---------------------------------------------------------------------------
def init_sage_params(key, c_in, c_out):
    k1, k2, k3 = jax.random.split(key, 3)
    scale = 1.0 / jnp.sqrt(jnp.float32(max(c_in, 1)))
    w_l = jax.random.uniform(k1, (c_in, c_out), jnp.float32, -scale, scale)
    w_r = jax.random.uniform(k2, (c_in, c_out), jnp.float32, -scale, scale)
    b_l = jax.random.uniform(k3, (1, c_out), jnp.float32, -scale, scale)
    return (w_l, w_r, b_l)


def init_model_params(key, in_channels, hidden, out_age, out_sex, out_eth):
    keys = jax.random.split(key, 6)
    return {
        "conv1": init_sage_params(keys[0], in_channels, hidden),
        "conv2": init_sage_params(keys[1], hidden, hidden),
        "conv3": init_sage_params(keys[2], hidden, hidden),
        "conv4_age": init_sage_params(keys[3], hidden, out_age),
        "conv4_sex": init_sage_params(keys[4], hidden, out_sex),
        "conv4_ethnicity": init_sage_params(keys[5], hidden, out_eth),
    }


def _pad2(a, rows, cols):
    out = jnp.zeros((rows, cols), jnp.float32)
    return out.at[:a.shape[0], :a.shape[1]].set(a)


def prepare_stacked_params(params, c_pad):
    """Fuse the three heads, stack [W_l; W_r] per layer -> [4, 2*c_pad, c_pad] bf16, biases -> [4,1,c_pad] f32."""
    layer_ws, layer_bs = [], []

    def add_layer(w_l, w_r, b_l):
        layer_ws.append(jnp.concatenate([_pad2(w_l, c_pad, c_pad),
                                         _pad2(w_r, c_pad, c_pad)], axis=0))   # [2*c_pad, c_pad]
        layer_bs.append(_pad2(b_l, 1, c_pad))                                  # [1, c_pad]

    for name in ("conv1", "conv2", "conv3"):
        add_layer(*params[name])

    # fused heads along the output-lane axis: [age | sex | ethnicity | 0-pad]
    wh_l = jnp.concatenate([params["conv4_age"][0], params["conv4_sex"][0],
                            params["conv4_ethnicity"][0]], axis=1)
    wh_r = jnp.concatenate([params["conv4_age"][1], params["conv4_sex"][1],
                            params["conv4_ethnicity"][1]], axis=1)
    bh = jnp.concatenate([params["conv4_age"][2], params["conv4_sex"][2],
                          params["conv4_ethnicity"][2]], axis=1)
    add_layer(wh_l, wh_r, bh)

    w_stack = jnp.stack(layer_ws, axis=0).astype(jnp.bfloat16)   # [4, 2*c_pad, c_pad]
    b_stack = jnp.stack(layer_bs, axis=0)                        # [4, 1, c_pad] f32
    return w_stack, b_stack


# ---------------------------------------------------------------------------
# Forward: single fused kernel call + head slicing (inputs are already padded).
# ---------------------------------------------------------------------------
@functools.partial(jax.jit,
                   static_argnames=("num_nodes", "out_age", "out_sex", "out_eth"))
def enhanced_gnn_forward(adj01, inv_deg, x_pad, w_stack, b_stack,
                         num_nodes, out_age, out_sex, out_eth):
    out = _fused_gnn_call(adj01, inv_deg, x_pad, w_stack, b_stack)   # [n_pad, 128] f32
    age_out = out[:num_nodes, :out_age]
    sex_out = out[:num_nodes, out_age:out_age + out_sex]
    eth_out = out[:num_nodes, out_age + out_sex:out_age + out_sex + out_eth]
    return age_out, sex_out, eth_out


# ---------------------------------------------------------------------------
# Pure-JAX references (for correctness checking).
# ---------------------------------------------------------------------------
def reference_forward_f32(params, x, adj_mean):
    def sage(x, p, relu):
        w_l, w_r, b_l = p
        out = (adj_mean @ x) @ w_l + b_l + x @ w_r
        return jnp.maximum(out, 0.0) if relu else out
    h = sage(x, params["conv1"], True)
    h = sage(h, params["conv2"], True)
    h = sage(h, params["conv3"], True)
    return (sage(h, params["conv4_age"], False),
            sage(h, params["conv4_sex"], False),
            sage(h, params["conv4_ethnicity"], False))


def reference_forward_bf16(params, x, adj01, inv_deg):
    """Mirrors the kernel numerics: bf16 operands, f32 accumulation, f32 1/deg scaling."""
    a = adj01.astype(jnp.bfloat16)

    def sage(xf, p, relu):
        w_l, w_r, b_l = p
        xb = xf.astype(jnp.bfloat16)
        agg = (jnp.dot(a, xb, preferred_element_type=jnp.float32) * inv_deg).astype(jnp.bfloat16)
        out = (jnp.dot(agg, w_l.astype(jnp.bfloat16), preferred_element_type=jnp.float32)
               + jnp.dot(xb, w_r.astype(jnp.bfloat16), preferred_element_type=jnp.float32)
               + b_l)
        return jnp.maximum(out, 0.0) if relu else out

    h = sage(x, params["conv1"], True)
    h = sage(h, params["conv2"], True)
    h = sage(h, params["conv3"], True)
    return (sage(h, params["conv4_age"], False),
            sage(h, params["conv4_sex"], False),
            sage(h, params["conv4_ethnicity"], False))


# ---------------------------------------------------------------------------
# Deterministic synthetic graph mirroring construct_initial_edge_index:
# every person node gets one edge to an age node, one to a sex node, one to an
# ethnicity node (attribute nodes follow the person nodes in the node ordering).
# ---------------------------------------------------------------------------
def make_synthetic_graph(num_persons, n_age, n_sex, n_eth):
    p = jnp.arange(num_persons, dtype=jnp.int32)
    age_id = (p % n_age) + num_persons
    sex_id = (p % n_sex) + num_persons + n_age
    eth_id = (p % n_eth) + num_persons + n_age + n_sex
    src = jnp.concatenate([p, p, p])
    dst = jnp.concatenate([age_id, sex_id, eth_id])
    edge_index = jnp.stack([src, dst], axis=0)                    # [2, 3*num_persons]

    person_nodes = jnp.arange(num_persons, dtype=jnp.float32)[:, None]
    age_nodes = jnp.arange(n_age, dtype=jnp.float32)[:, None]
    sex_nodes = jnp.arange(n_sex, dtype=jnp.float32)[:, None]
    eth_nodes = jnp.arange(n_eth, dtype=jnp.float32)[:, None]
    node_features = jnp.concatenate(
        [person_nodes, age_nodes, sex_nodes, eth_nodes], axis=0)  # [N, 1]
    return node_features, edge_index


if __name__ == "__main__":
    # Small shapes consistent with the module:
    #   in_channels=1, hidden=32, out_age=21, out_sex=2, out_ethnicity=5.
    num_persons = 8
    n_age, n_sex, n_eth = 21, 2, 5
    hidden = 32
    in_channels = 1

    x, edge_index = make_synthetic_graph(num_persons, n_age, n_sex, n_eth)
    num_nodes = x.shape[0]                                        # 8 + 21 + 2 + 5 = 36
    n_pad = _round_up(num_nodes, LANE)                            # 128 (lane-dense A / MXU tiles)

    # One-time padded graph + feature build (outside the per-forward jit path).
    adj01, inv_deg = build_padded_graph(edge_index, n_pad)
    x_pad = pad_features(x, n_pad, LANE)

    params = init_model_params(jax.random.PRNGKey(0),
                               in_channels=in_channels, hidden=hidden,
                               out_age=n_age, out_sex=n_sex, out_eth=n_eth)
    w_stack, b_stack = prepare_stacked_params(params, LANE)       # one-time fuse + stack + pad

    age_out, sex_out, eth_out = enhanced_gnn_forward(
        adj01, inv_deg, x_pad, w_stack, b_stack,
        num_nodes=num_nodes, out_age=n_age, out_sex=n_sex, out_eth=n_eth)
    jax.block_until_ready((age_out, sex_out, eth_out))

    assert age_out.shape == (num_nodes, n_age)
    assert sex_out.shape == (num_nodes, n_sex)
    assert eth_out.shape == (num_nodes, n_eth)

    # Correctness 1: vs a pure-JAX reference with matching bf16/f32-acc numerics.
    adj01_s = adj01[:num_nodes, :num_nodes]
    inv_deg_s = inv_deg[:num_nodes]
    ref_bf = reference_forward_bf16(params, x, adj01_s, inv_deg_s)
    for got, ref in zip((age_out, sex_out, eth_out), ref_bf):
        assert jnp.allclose(got, ref, atol=2e-1, rtol=5e-2), "mismatch vs bf16-numerics reference"

    # Correctness 2 (looser, absorbs bf16 rounding): vs the full-f32 SAGEConv reference.
    adj_mean = adj01_s.astype(jnp.float32) * inv_deg_s
    ref_f32 = reference_forward_f32(params, x, adj_mean)
    for got, ref in zip((age_out, sex_out, eth_out), ref_f32):
        assert jnp.allclose(got, ref, atol=1.0, rtol=1e-1), "mismatch vs f32 reference"

    print("KERNEL_OK")
</pallas_src>

<mosaic_0001>
module attributes {stable_mosaic.version = 11 : i64} {
  func.func @_fused_gnn_kernel(%arg0: memref<128x128xbf16, #tpu.memory_space<vmem>>, %arg1: memref<128x1xf32, #tpu.memory_space<vmem>>, %arg2: memref<128x128xbf16, #tpu.memory_space<vmem>>, %arg3: memref<4x256x128xbf16, #tpu.memory_space<vmem>>, %arg4: memref<4x1x128xf32, #tpu.memory_space<vmem>>, %arg5: memref<128x128xf32, #tpu.memory_space<vmem>>) attributes {dimension_semantics = [], scalar_prefetch = 0 : i64, scratch_operands = 0 : i64, tpu.core_type = #tpu.core_type<tc>} {
    %c0 = arith.constant 0 : index
    %c0_0 = arith.constant 0 : index
    %0 = vector.load %arg0[%c0, %c0_0] : memref<128x128xbf16, #tpu.memory_space<vmem>>, vector<128x128xbf16>
    %c0_1 = arith.constant 0 : index
    %c0_2 = arith.constant 0 : index
    %1 = vector.load %arg1[%c0_1, %c0_2] : memref<128x1xf32, #tpu.memory_space<vmem>>, vector<128x1xf32>
    %c0_3 = arith.constant 0 : index
    %c0_4 = arith.constant 0 : index
    %2 = vector.load %arg2[%c0_3, %c0_4] : memref<128x128xbf16, #tpu.memory_space<vmem>>, vector<128x128xbf16>
    %cst = arith.constant dense<0.000000e+00> : vector<128x128xf32>
    %3 = tpu.matmul %0, %2, %cst {dimension_numbers = #tpu.dot_dimension_numbers<[1], [0], [0], [1], [0, 0, 1, 1], [], []>} : vector<128x128xbf16>, vector<128x128xbf16>, vector<128x128xf32> -> vector<128x128xf32>
    %4 = vector.broadcast %1 : vector<128x1xf32> to vector<128x128xf32>
    %5 = arith.mulf %3, %4 : vector<128x128xf32>
    %6 = arith.truncf %5 : vector<128x128xf32> to vector<128x128xbf16>
    %7 = tpu.concatenate %6, %2 in 1 : vector<128x128xbf16>, vector<128x128xbf16> -> vector<128x256xbf16>
    %c0_5 = arith.constant 0 : index
    %c0_6 = arith.constant 0 : index
    %c0_7 = arith.constant 0 : index
    %8 = vector.load %arg3[%c0_5, %c0_6, %c0_7] : memref<4x256x128xbf16, #tpu.memory_space<vmem>>, vector<1x256x128xbf16>
    %9 = vector.shape_cast %8 : vector<1x256x128xbf16> to vector<256x128xbf16>
    %cst_8 = arith.constant dense<0.000000e+00> : vector<128x128xf32>
    %10 = tpu.matmul %7, %9, %cst_8 {dimension_numbers = #tpu.dot_dimension_numbers<[1], [0], [0], [1], [0, 0, 1, 1], [], []>} : vector<128x256xbf16>, vector<256x128xbf16>, vector<128x128xf32> -> vector<128x128xf32>
    %c0_9 = arith.constant 0 : index
    %c0_10 = arith.constant 0 : index
    %c0_11 = arith.constant 0 : index
    %11 = vector.load %arg4[%c0_9, %c0_10, %c0_11] : memref<4x1x128xf32, #tpu.memory_space<vmem>>, vector<1x1x128xf32>
    %12 = vector.shape_cast %11 : vector<1x1x128xf32> to vector<1x128xf32>
    %13 = vector.broadcast %12 : vector<1x128xf32> to vector<128x128xf32>
    %14 = arith.addf %10, %13 : vector<128x128xf32>
    %cst_12 = arith.constant 0.000000e+00 : f32
    %15 = vector.broadcast %cst_12 : f32 to vector<128x128xf32>
    %16 = arith.maximumf %14, %15 : vector<128x128xf32>
    %17 = arith.truncf %16 : vector<128x128xf32> to vector<128x128xbf16>
    %cst_13 = arith.constant dense<0.000000e+00> : vector<128x128xf32>
    %18 = tpu.matmul %0, %17, %cst_13 {dimension_numbers = #tpu.dot_dimension_numbers<[1], [0], [0], [1], [0, 0, 1, 1], [], []>} : vector<128x128xbf16>, vector<128x128xbf16>, vector<128x128xf32> -> vector<128x128xf32>
    %19 = vector.broadcast %1 : vector<128x1xf32> to vector<128x128xf32>
    %20 = arith.mulf %18, %19 : vector<128x128xf32>
    %21 = arith.truncf %20 : vector<128x128xf32> to vector<128x128xbf16>
    %22 = tpu.concatenate %21, %17 in 1 : vector<128x128xbf16>, vector<128x128xbf16> -> vector<128x256xbf16>
    %c1 = arith.constant 1 : index
    %c0_14 = arith.constant 0 : index
    %c0_15 = arith.constant 0 : index
    %23 = vector.load %arg3[%c1, %c0_14, %c0_15] : memref<4x256x128xbf16, #tpu.memory_space<vmem>>, vector<1x256x128xbf16>
    %24 = vector.shape_cast %23 : vector<1x256x128xbf16> to vector<256x128xbf16>
    %cst_16 = arith.constant dense<0.000000e+00> : vector<128x128xf32>
    %25 = tpu.matmul %22, %24, %cst_16 {dimension_numbers = #tpu.dot_dimension_numbers<[1], [0], [0], [1], [0, 0, 1, 1], [], []>} : vector<128x256xbf16>, vector<256x128xbf16>, vector<128x128xf32> -> vector<128x128xf32>
    %c1_17 = arith.constant 1 : index
    %c0_18 = arith.constant 0 : index
    %c0_19 = arith.constant 0 : index
    %26 = vector.load %arg4[%c1_17, %c0_18, %c0_19] : memref<4x1x128xf32, #tpu.memory_space<vmem>>, vector<1x1x128xf32>
    %27 = vector.shape_cast %26 : vector<1x1x128xf32> to vector<1x128xf32>
    %28 = vector.broadcast %27 : vector<1x128xf32> to vector<128x128xf32>
    %29 = arith.addf %25, %28 : vector<128x128xf32>
    %cst_20 = arith.constant 0.000000e+00 : f32
    %30 = vector.broadcast %cst_20 : f32 to vector<128x128xf32>
    %31 = arith.maximumf %29, %30 : vector<128x128xf32>
    %32 = arith.truncf %31 : vector<128x128xf32> to vector<128x128xbf16>
    %cst_21 = arith.constant dense<0.000000e+00> : vector<128x128xf32>
    %33 = tpu.matmul %0, %32, %cst_21 {dimension_numbers = #tpu.dot_dimension_numbers<[1], [0], [0], [1], [0, 0, 1, 1], [], []>} : vector<128x128xbf16>, vector<128x128xbf16>, vector<128x128xf32> -> vector<128x128xf32>
    %34 = vector.broadcast %1 : vector<128x1xf32> to vector<128x128xf32>
    %35 = arith.mulf %33, %34 : vector<128x128xf32>
    %36 = arith.truncf %35 : vector<128x128xf32> to vector<128x128xbf16>
    %37 = tpu.concatenate %36, %32 in 1 : vector<128x128xbf16>, vector<128x128xbf16> -> vector<128x256xbf16>
    %c2 = arith.constant 2 : index
    %c0_22 = arith.constant 0 : index
    %c0_23 = arith.constant 0 : index
    %38 = vector.load %arg3[%c2, %c0_22, %c0_23] : memref<4x256x128xbf16, #tpu.memory_space<vmem>>, vector<1x256x128xbf16>
    %39 = vector.shape_cast %38 : vector<1x256x128xbf16> to vector<256x128xbf16>
    %cst_24 = arith.constant dense<0.000000e+00> : vector<128x128xf32>
    %40 = tpu.matmul %37, %39, %cst_24 {dimension_numbers = #tpu.dot_dimension_numbers<[1], [0], [0], [1], [0, 0, 1, 1], [], []>} : vector<128x256xbf16>, vector<256x128xbf16>, vector<128x128xf32> -> vector<128x128xf32>
    %c2_25 = arith.constant 2 : index
    %c0_26 = arith.constant 0 : index
    %c0_27 = arith.constant 0 : index
    %41 = vector.load %arg4[%c2_25, %c0_26, %c0_27] : memref<4x1x128xf32, #tpu.memory_space<vmem>>, vector<1x1x128xf32>
    %42 = vector.shape_cast %41 : vector<1x1x128xf32> to vector<1x128xf32>
    %43 = vector.broadcast %42 : vector<1x128xf32> to vector<128x128xf32>
    %44 = arith.addf %40, %43 : vector<128x128xf32>
    %cst_28 = arith.constant 0.000000e+00 : f32
    %45 = vector.broadcast %cst_28 : f32 to vector<128x128xf32>
    %46 = arith.maximumf %44, %45 : vector<128x128xf32>
    %47 = arith.truncf %46 : vector<128x128xf32> to vector<128x128xbf16>
    %cst_29 = arith.constant dense<0.000000e+00> : vector<128x128xf32>
    %48 = tpu.matmul %0, %47, %cst_29 {dimension_numbers = #tpu.dot_dimension_numbers<[1], [0], [0], [1], [0, 0, 1, 1], [], []>} : vector<128x128xbf16>, vector<128x128xbf16>, vector<128x128xf32> -> vector<128x128xf32>
    %49 = vector.broadcast %1 : vector<128x1xf32> to vector<128x128xf32>
    %50 = arith.mulf %48, %49 : vector<128x128xf32>
    %51 = arith.truncf %50 : vector<128x128xf32> to vector<128x128xbf16>
    %52 = tpu.concatenate %51, %47 in 1 : vector<128x128xbf16>, vector<128x128xbf16> -> vector<128x256xbf16>
    %c3 = arith.constant 3 : index
    %c0_30 = arith.constant 0 : index
    %c0_31 = arith.constant 0 : index
    %53 = vector.load %arg3[%c3, %c0_30, %c0_31] : memref<4x256x128xbf16, #tpu.memory_space<vmem>>, vector<1x256x128xbf16>
    %54 = vector.shape_cast %53 : vector<1x256x128xbf16> to vector<256x128xbf16>
    %cst_32 = arith.constant dense<0.000000e+00> : vector<128x128xf32>
    %55 = tpu.matmul %52, %54, %cst_32 {dimension_numbers = #tpu.dot_dimension_numbers<[1], [0], [0], [1], [0, 0, 1, 1], [], []>} : vector<128x256xbf16>, vector<256x128xbf16>, vector<128x128xf32> -> vector<128x128xf32>
    %c3_33 = arith.constant 3 : index
    %c0_34 = arith.constant 0 : index
    %c0_35 = arith.constant 0 : index
    %56 = vector.load %arg4[%c3_33, %c0_34, %c0_35] : memref<4x1x128xf32, #tpu.memory_space<vmem>>, vector<1x1x128xf32>
    %57 = vector.shape_cast %56 : vector<1x1x128xf32> to vector<1x128xf32>
    %58 = vector.broadcast %57 : vector<1x128xf32> to vector<128x128xf32>
    %59 = arith.addf %55, %58 : vector<128x128xf32>
    %c0_36 = arith.constant 0 : index
    %c0_37 = arith.constant 0 : index
    %60 = vector.load %arg5[%c0_36, %c0_37] : memref<128x128xf32, #tpu.memory_space<vmem>>, vector<128x128xf32>
    tpu.vector_store %arg5[%c0_36, %c0_37], %59 {strides = array<i32>} : memref<128x128xf32, #tpu.memory_space<vmem>>, vector<128x128xf32>,
    return
  }
}

</mosaic_0001>

<bundles_post_ra>
// kernel: enhanced_gnn_forward.1
= control target key start
LH: loop header
LB: loop body
LE: loop exit
PB: predicated region body
PF: predicated region fallthrough
CT: control target
= control target key end

     0   :  { %10 = vsyncpa [#allocation3], 0  ;;  %s2422_s18 = smov [#allocation2]   ;;  %s3026_s0 = inlined_call_operand.vmem [shape: bf16[128,128], index: 0, kind: input, shape index: {}]   ;;  %s3027_s1 = inlined_call_operand.vmem [shape: f32[128,1], index: 1, kind: input, shape index: {}]   ;;  %s3028_s2 = inlined_call_operand.vmem [shape: bf16[128,128], index: 2, kind: input, shape index: {}]   ;;  %s3029_s3 = inlined_call_operand.hbm [shape: bf16[4,256,128], index: 3, kind: input, shape index: {}]   ;;  %s3030_s4 = inlined_call_operand.vmem [shape: f32[4,1,128], index: 4, kind: input, shape index: {}]   ;;  %s3031_s5 = inlined_call_operand.vmem [shape: f32[128,128], index: 5, kind: output, shape index: {}]  }
   0x1   :  { %s22_s19 = sshll.u32 %s2422_s18, 4  ;;  %s2398_s22 = scalar_lea.hbm %s3029_s3, 8192  ;;  %s23_s19 = int_to_ptr.vmem [resolvable:$true] %s22_s19 }
   0x2   :  { %p2399_p0 = scmp.ne.s32.totalorder %s3029_s3, %s2398_s22  ;;  %p2402_p1 = scmp.lt.u32.totalorder %s2398_s22, %s3029_s3 }
   0x4   :  { %p2404_p2 = pnand %p2402_p1, %p2399_p0 }
   0x6   :  { %2407 = shalt.err (!%p2404_p2)
}
   0x7   :  { %s2408_s27 = scalar_lea.vmem %s23_s19, 8192  ;;  %p2413_p4 = scmp.lt.s32.totalorder %s23_s19, %s23_s19 }
   0x8   :  { %p2409_p3 = scmp.ne.s32.totalorder %s23_s19, %s2408_s27  ;;  %p2414_p5 = scmp.lt.s32.totalorder %s2408_s27, %s2408_s27 }
   0xa   :  { %p2415_p6 = por %p2414_p5, %p2413_p4 }
   0xc   :  { %p2416_p7 = pnand %p2415_p6, %p2409_p3 }
   0xe   :  { %2419 = shalt.err (!%p2416_p7)
}
   0xf   :  { %s2423_s28 = smov 64   ;;  %s2424_s29 = smov 4  }
  0x10   :  { %28 = dma.hbm_to_vmem [thread:$0]  %s3029_s3, 8192, %s23_s19, [#allocation3], %s2423_s28, %s2423_s28, %s2424_s29  }
  0x11   :  { %2420 = dma.done.wait [#allocation3], 8192  }
  0x12   :  { %2421 = vsyncadd [#allocation3], 4294959104  ;;  %v2425_v0 = vmov 0   ;;  %v2471_v1 = vld [vmem:[%s3028_s2] sm:$0xff]   ;;  %v2476_v2 = vld [vmem:[%s3028_s2 + $0x8] sm:$0xff]  }
  0x13   :  { %2309 = vset.pattern.permute.xlu0 %v2425_v0  ;;  %2310 = vset.pattern.permute.xlu1 %v2425_v0  ;;  %v2484_v3 = vld [vmem:[%s3028_s2 + $0x10] sm:$0xff]   ;;  %v2490_v4 = vld [vmem:[%s3028_s2 + $0x18] sm:$0xff]   ;;  %v2496_v5 = vld [vmem:[%s3026_s0] sm:$0xff]  }
  0x14   :  { %2177 = vmatprep.subr.bf16.mxu1 %v2471_v1  ;;  %2193 = vmatprep.mubr.bf16.mxu1 %v2496_v5  ;;  %v2505_v6 = vld [vmem:[%s3028_s2 + $0x20] sm:$0xff]   ;;  %v2512_v7 = vld [vmem:[%s3028_s2 + $0x28] sm:$0xff]   ;;  %v53_v9 = vld [vmem:[%s3027_s1 + $0x10] sm:$0xff] }
  0x15   :  { %2178 = vmatpush3.bf16.msra.mxu1 %v2471_v1  ;;  %2225 = vmatprep.mubr.bf16.mxu0 %v2496_v5  ;;  %v51_v8 = vld [vmem:[%s3027_s1] sm:$0xff]  ;;  %v52_v10 = vld [vmem:[%s3027_s1 + $0x8] sm:$0xff]  ;;  %v54_v11 = vld [vmem:[%s3027_s1 + $0x18] sm:$0xff] }
  0x16   :  { %2179 = vmatprep.subr.bf16.mxu1 %v2476_v2  ;;  %278 = vperm.xlu0 %2309, %v51_v8   ;;  %v2531_v12 = vld [vmem:[%s3028_s2 + $0x30] sm:$0xff]   ;;  %v55_v13 = vld [vmem:[%s3027_s1 + $0x20] sm:$0xff]  ;;  %v56_v14 = vld [vmem:[%s3027_s1 + $0x28] sm:$0xff] }
  0x17   :  { %288 = vperm.xlu1 %2310, %v53_v9   ;;  %v2543_v15 = vld [vmem:[%s3028_s2 + $0x38] sm:$0xff]   ;;  %v57_v16 = vld [vmem:[%s3027_s1 + $0x30] sm:$0xff]  ;;  %v2557_v18 = vld [vmem:[%s3026_s0 + $0x8] sm:$0xff]  }
  0x18   :  { %v58_v17 = vld [vmem:[%s3027_s1 + $0x38] sm:$0xff]  ;;  %v59_v19 = vld [vmem:[%s3027_s1 + $0x40] sm:$0xff]  ;;  %v60_v20 = vld [vmem:[%s3027_s1 + $0x48] sm:$0xff] }
  0x19   :  { %2180 = vmatpush3.bf16.msra.mxu1 %v2476_v2  ;;  %v2327_v21 = vld [vmem:[#allocation2 + $0x40] sm:$0xff]   ;;  %v2568_v22 = vld [vmem:[%s3026_s0 + $0x10] sm:$0xff]   ;;  %v62_v25 = vld [vmem:[%s3027_s1 + $0x58] sm:$0xff] }
  0x1a   :  { %2181 = vmatprep.subr.bf16.mxu1 %v2484_v3  ;;  %283 = vperm.xlu0 %2309, %v52_v10   ;;  %v2328_v23 = vld [vmem:[#allocation2] sm:$0xff]   ;;  %v61_v24 = vld [vmem:[%s3027_s1 + $0x50] sm:$0xff]  ;;  %v2329_v26 = vld [vmem:[#allocation2 + $0x48] sm:$0xff]  }
  0x1b   :  { %293 = vperm.xlu1 %2310, %v54_v11   ;;  %v2330_v27 = vld [vmem:[#allocation2 + $0x8] sm:$0xff]   ;;  %v2582_v28 = vld [vmem:[%s3026_s0 + $0x18] sm:$0xff]   ;;  %v63_v29 = vld [vmem:[%s3027_s1 + $0x60] sm:$0xff] }
  0x1c   :  { %v64_v30 = vld [vmem:[%s3027_s1 + $0x68] sm:$0xff]  ;;  %v2331_v31 = vld [vmem:[#allocation2 + $0x50] sm:$0xff]   ;;  %v2593_v32 = vld [vmem:[%s3026_s0 + $0x20] sm:$0xff]  }
  0x1d   :  { %2182 = vmatpush3.bf16.msra.mxu1 %v2484_v3  ;;  %v2332_v33 = vld [vmem:[#allocation2 + $0x10] sm:$0xff]   ;;  %v66_v35 = vld [vmem:[%s3027_s1 + $0x78] sm:$0xff]  ;;  %v2335_v38 = vld [vmem:[#allocation2 + $0x60] sm:$0xff]  }
  0x1e   :  { %2183 = vmatprep.subr.bf16.mxu1 %v2490_v4  ;;  %298 = vperm.xlu0 %2309, %v55_v13   ;;  %v65_v34 = vld [vmem:[%s3027_s1 + $0x70] sm:$0xff]  ;;  %v2333_v36 = vld [vmem:[#allocation2 + $0x58] sm:$0xff]   ;;  %v2606_v39 = vld [vmem:[%s3026_s0 + $0x28] sm:$0xff]  }
  0x1f   :  { %303 = vperm.xlu1 %2310, %v56_v14   ;;  %v2334_v37 = vld [vmem:[#allocation2 + $0x18] sm:$0xff]   ;;  %v2611_v40 = vld [vmem:[%s3026_s0 + $0x30] sm:$0xff]   ;;  %v2336_v41 = vld [vmem:[#allocation2 + $0x20] sm:$0xff]  }
  0x20   :  { %v2337_v42 = vld [vmem:[#allocation2 + $0x68] sm:$0xff]   ;;  %v2618_v44 = vld [vmem:[%s3026_s0 + $0x38] sm:$0xff]   ;;  %v2339_v45 = vld [vmem:[#allocation2 + $0x70] sm:$0xff]  }
  0x21   :  { %2184 = vmatpush3.bf16.msra.mxu1 %v2490_v4  ;;  %v2338_v43 = vld [vmem:[#allocation2 + $0x28] sm:$0xff]   ;;  %v2340_v46 = vld [vmem:[#allocation2 + $0x30] sm:$0xff]   ;;  %v2341_v47 = vld [vmem:[#allocation2 + $0x78] sm:$0xff]  }
  0x22   :  { %2185 = vmatprep.subr.bf16.mxu1 %v2505_v6  ;;  %308 = vperm.xlu0 %2309, %v57_v16   ;;  %v2342_v48 = vld [vmem:[#allocation2 + $0x38] sm:$0xff]  }
  0x23   :  { %313 = vperm.xlu1 %2310, %v58_v17  }
  0x25   :  { %2186 = vmatpush3.bf16.msra.mxu1 %v2505_v6 }
  0x26   :  { %2187 = vmatprep.subr.bf16.mxu1 %v2512_v7  ;;  %318 = vperm.xlu0 %2309, %v59_v19  }
  0x27   :  { %323 = vperm.xlu1 %2310, %v60_v20  }
  0x29   :  { %2188 = vmatpush3.bf16.msra.mxu1 %v2512_v7 }
  0x2a   :  { %2189 = vmatprep.subr.bf16.mxu1 %v2531_v12  ;;  %328 = vperm.xlu0 %2309, %v61_v24  }
  0x2b   :  { %333 = vperm.xlu1 %2310, %v62_v25  }
  0x2d   :  { %2190 = vmatpush3.bf16.msra.mxu1 %v2531_v12 }
  0x2e   :  { %2191 = vmatprep.subr.bf16.mxu1 %v2543_v15  ;;  %338 = vperm.xlu0 %2309, %v63_v29  }
  0x2f   :  { %343 = vperm.xlu1 %2310, %v64_v30  }
  0x31   :  { %2192 = vmatpush3.bf16.msra.mxu1 %v2543_v15 }
  0x32   :  { %1873 = vmatprep.subr.bf16.mxu1 %v2327_v21  ;;  %348 = vperm.xlu0 %2309, %v65_v34  }
  0x33   :  { %353 = vperm.xlu1 %2310, %v66_v35  }
  0x34   :  { %2194 = vmatmul.mubr.bf16.vlgmr.msra.gmra.mrb[0].mxu1 %v2557_v18 }
  0x35   :  { %2197 = vmatprep.mubr.bf16.mxu1 %v2568_v22  ;;  %1874 = vmatpush3.bf16.msra.mxu1 %v2328_v23 }
  0x36   :  { %1875 = vmatprep.subr.bf16.mxu1 %v2329_v26 }
  0x39   :  { %1876 = vmatpush3.bf16.msra.mxu1 %v2330_v27 }
  0x3a   :  { %1877 = vmatprep.subr.bf16.mxu1 %v2331_v31 }
  0x3c   :  { %2198 = vmatmul.mubr.bf16.gmra.mrb[4].mxu1 %v2582_v28 }
  0x3d   :  { %2201 = vmatprep.mubr.bf16.mxu1 %v2593_v32  ;;  %1878 = vmatpush3.bf16.msra.mxu1 %v2332_v33 }
  0x3e   :  { %1879 = vmatprep.subr.bf16.mxu1 %v2333_v36 }
  0x41   :  { %1880 = vmatpush3.bf16.msra.mxu1 %v2334_v37 }
  0x42   :  { %1881 = vmatprep.subr.bf16.mxu1 %v2335_v38 }
  0x44   :  { %2202 = vmatmul.mubr.bf16.gmra.mrb[8].mxu1 %v2606_v39 }
  0x45   :  { %2205 = vmatprep.mubr.bf16.mxu1 %v2611_v40  ;;  %1882 = vmatpush3.bf16.msra.mxu1 %v2336_v41 }
  0x46   :  { %1883 = vmatprep.subr.bf16.mxu1 %v2337_v42 }
  0x49   :  { %1884 = vmatpush3.bf16.msra.mxu1 %v2338_v43 }
  0x4a   :  { %1885 = vmatprep.subr.bf16.mxu1 %v2339_v45 }
  0x4c   :  { %2206 = vmatmul.mubr.bf16.gmra.mrb[12].mxu1 %v2618_v44 }
  0x4d   :  { %547 = vmatprep.mubr.bf16.mxu1 %v2471_v1  ;;  %1886 = vmatpush3.bf16.msra.mxu1 %v2340_v46 }
  0x4e   :  { %1887 = vmatprep.subr.bf16.mxu1 %v2341_v47 }
  0x51   :  { %1888 = vmatpush3.bf16.msra.mxu1 %v2342_v48 }
  0x95   :  { %v2622_v49 = vpop.permute.xlu0 %278 }
  0x96   :  { %v2624_v50 = vpop.permute.xlu1 %288 }
  0x99   :  { %v2626_v51 = vpop.permute.xlu0 %283 }
  0x9a   :  { %v2628_v52 = vpop.permute.xlu1 %293 }
  0x9d   :  { %v2630_v53 = vpop.permute.xlu0 %298 }
  0x9e   :  { %v2632_v54 = vpop.permute.xlu1 %303 }
  0xa1   :  { %v2634_v56 = vpop.permute.xlu0 %308 }
  0xa2   :  { %v2636_v58 = vpop.permute.xlu1 %313 }
  0xa5   :  { %v2642_v9 = vpop.permute.xlu0 %318 }
  0xa6   :  { %v2644_v10 = vpop.permute.xlu1 %323 }
  0xa9   :  { %v2651_v23 = vpop.permute.xlu0 %328 }
  0xaa   :  { %v2653_v25 = vpop.permute.xlu1 %333 }
  0xad   :  { %v2656_v30 = vpop.permute.xlu0 %338 }
  0xae   :  { %v2660_v35 = vpop.permute.xlu1 %343 }
  0xb1   :  { %v2664_v43 = vpop.permute.xlu0 %348 }
  0xb2   :  { %v2667_v45 = vpop.permute.xlu1 %353 }
 0x107   :  { %v2195_v55 = vpop.f32.mrb[0].mxu1 }
 0x108   :  { %v213_v57 = vpop.f32.mrb[1].mxu1  ;;  %v358_v60 = vmul.f32 %v2195_v55, %v2624_v50 }
 0x109   :  { %v2196_v59 = vpop.f32.mrb[2].mxu1  ;;  %v356_v63 = vmul.f32 %v2622_v49, %v213_v57 }
 0x10a   :  { %v359_v61 = vmul.f32 %v2196_v59, %v2628_v52  ;;  %v216_v62 = vpop.f32.mrb[3].mxu1 }
 0x10b   :  { %v357_v0 = vmul.f32 %v2626_v51, %v216_v62  ;;  %v2681_v62 = vld [vmem:[%s3030_s4] ss:$0 sm:$0xff] }
 0x10c   :  { %v373_v1 = vpack.c.bf16 %v359_v61, %v358_v60 }
 0x10d   :  { %v372_v8 = vpack.c.bf16 %v357_v0, %v356_v63 }
 0x10f   :  { %v2199_v11 = vpop.f32.mrb[4].mxu1  ;;  %548 = vmatmul.mubr.bf16.vlgmr.msra.gmra.mrb[16].mxu1 %v372_v8 }
 0x110   :  { %v229_v13 = vpop.f32.mrb[5].mxu1  ;;  %555 = vmatprep.mubr.bf16.mxu1 %v2476_v2  ;;  %v362_v16 = vmul.f32 %v2199_v11, %v2634_v56 }
 0x111   :  { %v2200_v14 = vpop.f32.mrb[6].mxu1  ;;  %v360_v20 = vmul.f32 %v2630_v53, %v229_v13 }
 0x112   :  { %v363_v17 = vmul.f32 %v2200_v14, %v2636_v58  ;;  %v232_v19 = vpop.f32.mrb[7].mxu1 }
 0x113   :  { %v361_v21 = vmul.f32 %v2632_v54, %v232_v19 }
 0x114   :  { %v375_v24 = vpack.c.bf16 %v363_v17, %v362_v16 }
 0x115   :  { %v374_v26 = vpack.c.bf16 %v361_v21, %v360_v20 }
 0x117   :  { %v2203_v27 = vpop.f32.mrb[8].mxu1  ;;  %556 = vmatmul.mubr.bf16.gmra.mrb[20].mxu1 %v373_v1 }
 0x118   :  { %v245_v29 = vpop.f32.mrb[9].mxu1  ;;  %563 = vmatprep.mubr.bf16.mxu1 %v2484_v3  ;;  %v366_v31 = vmul.f32 %v2203_v27, %v2651_v23 }
 0x119   :  { %v2204_v2 = vpop.f32.mrb[10].mxu1  ;;  %v364_v36 = vmul.f32 %v2642_v9, %v245_v29 }
 0x11a   :  { %v367_v33 = vmul.f32 %v2204_v2, %v2653_v25  ;;  %v248_v34 = vpop.f32.mrb[11].mxu1 }
 0x11b   :  { %v365_v37 = vmul.f32 %v2644_v10, %v248_v34 }
 0x11c   :  { %v377_v38 = vpack.c.bf16 %v367_v33, %v366_v31 }
 0x11d   :  { %v376_v41 = vpack.c.bf16 %v365_v37, %v364_v36 }
 0x11f   :  { %v2207_v42 = vpop.f32.mrb[12].mxu1  ;;  %564 = vmatmul.mubr.bf16.gmra.mrb[24].mxu1 %v374_v26 }
 0x120   :  { %v261_v3 = vpop.f32.mrb[13].mxu1  ;;  %571 = vmatprep.mubr.bf16.mxu1 %v2490_v4  ;;  %v370_v47 = vmul.f32 %v2207_v42, %v2664_v43 }
 0x121   :  { %v2208_v46 = vpop.f32.mrb[14].mxu1  ;;  %v368_v57 = vmul.f32 %v2656_v30, %v261_v3 }
 0x122   :  { %v371_v48 = vmul.f32 %v2208_v46, %v2667_v45  ;;  %v264_v55 = vpop.f32.mrb[15].mxu1 }
 0x123   :  { %v369_v59 = vmul.f32 %v2660_v35, %v264_v55 }
 0x124   :  { %v379_v60 = vpack.c.bf16 %v371_v48, %v370_v47 }
 0x125   :  { %v378_v61 = vpack.c.bf16 %v369_v59, %v368_v57 }
 0x127   :  { %572 = vmatmul.mubr.bf16.gmra.mrb[28].mxu1 %v375_v24 }
 0x128   :  { %579 = vmatprep.mubr.bf16.mxu1 %v2505_v6 }
 0x12f   :  { %580 = vmatmul.mubr.bf16.gmra.mrb[32].mxu1 %v376_v41 }
 0x130   :  { %587 = vmatprep.mubr.bf16.mxu1 %v2512_v7 }
 0x137   :  { %588 = vmatmul.mubr.bf16.gmra.mrb[36].mxu1 %v377_v38 }
 0x138   :  { %595 = vmatprep.mubr.bf16.mxu1 %v2531_v12 }
 0x13f   :  { %596 = vmatmul.mubr.bf16.gmra.mrb[40].mxu1 %v378_v61 }
 0x140   :  { %603 = vmatprep.mubr.bf16.mxu1 %v2543_v15 }
 0x147   :  { %604 = vmatmul.mubr.bf16.gmra.mrb[44].mxu1 %v379_v60 }
 0x148   :  { %2257 = vmatprep.mubr.bf16.mxu1 %v2496_v5 }
 0x1e2   :  { %v1889_v4 = vpop.f32.mrb[16].mxu1 }
 0x1e3   :  { %v1890_v63 = vpop.f32.mrb[17].mxu1 }
 0x1e4   :  { %v1891_v6 = vadd.f32 %v1890_v63, %v1889_v4  ;;  %v1892_v0 = vpop.f32.mrb[18].mxu1 }
 0x1e5   :  { %v1893_v1 = vpop.f32.mrb[19].mxu1 }
 0x1e6   :  { %v550_v7 = vadd.f32 %v1891_v6, %v2681_v62  ;;  %v1894_v8 = vadd.f32 %v1893_v1, %v1892_v0 }
 0x1e8   :  { %v553_v12 = vadd.f32 %v1894_v8, %v2681_v62  ;;  %v612_v11 = vmax.f32 %v550_v7, 0.0 }
 0x1ea   :  { %v613_v15 = vmax.f32 %v553_v12, 0.0  ;;  %v1895_v13 = vpop.f32.mrb[20].mxu1 }
 0x1eb   :  { %v1896_v14 = vpop.f32.mrb[21].mxu1 }
 0x1ec   :  { %v1897_v16 = vadd.f32 %v1896_v14, %v1895_v13  ;;  %v1898_v17 = vpop.f32.mrb[22].mxu1  ;;  %v2685_v19 = vpack.c.bf16 %v613_v15, %v612_v11 }
 0x1ed   :  { %v1899_v20 = vpop.f32.mrb[23].mxu1 }
 0x1ee   :  { %v558_v21 = vadd.f32 %v1897_v16, %v2681_v62  ;;  %v1900_v24 = vadd.f32 %v1899_v20, %v1898_v17  ;;  %2209 = vmatprep.subr.bf16.mxu0 %v2685_v19 }
 0x1ef   :  { %2210 = vmatpush3.bf16.msra.mxu0 %v2685_v19 }
 0x1f0   :  { %v561_v26 = vadd.f32 %v1900_v24, %v2681_v62  ;;  %v614_v27 = vmax.f32 %v558_v21, 0.0 }
 0x1f2   :  { %v615_v29 = vmax.f32 %v561_v26, 0.0  ;;  %v1901_v2 = vpop.f32.mrb[24].mxu1 }
 0x1f3   :  { %v1902_v31 = vpop.f32.mrb[25].mxu1 }
 0x1f4   :  { %v1903_v33 = vadd.f32 %v1902_v31, %v1901_v2  ;;  %v1904_v34 = vpop.f32.mrb[26].mxu1  ;;  %v2691_v36 = vpack.c.bf16 %v615_v29, %v614_v27 }
 0x1f5   :  { %v1905_v37 = vpop.f32.mrb[27].mxu1 }
 0x1f6   :  { %v566_v38 = vadd.f32 %v1903_v33, %v2681_v62  ;;  %v1906_v41 = vadd.f32 %v1905_v37, %v1904_v34  ;;  %2211 = vmatprep.subr.bf16.mxu0 %v2691_v36 }
 0x1f7   :  { %2212 = vmatpush3.bf16.msra.mxu0 %v2691_v36 }
 0x1f8   :  { %v569_v42 = vadd.f32 %v1906_v41, %v2681_v62  ;;  %v616_v3 = vmax.f32 %v566_v38, 0.0 }
 0x1fa   :  { %v617_v46 = vmax.f32 %v569_v42, 0.0  ;;  %v1907_v47 = vpop.f32.mrb[28].mxu1 }
 0x1fb   :  { %v1908_v48 = vpop.f32.mrb[29].mxu1 }
 0x1fc   :  { %v1909_v55 = vadd.f32 %v1908_v48, %v1907_v47  ;;  %v1910_v57 = vpop.f32.mrb[30].mxu1  ;;  %v2697_v59 = vpack.c.bf16 %v617_v46, %v616_v3 }
 0x1fd   :  { %v1911_v60 = vpop.f32.mrb[31].mxu1 }
 0x1fe   :  { %v574_v61 = vadd.f32 %v1909_v55, %v2681_v62  ;;  %v1912_v4 = vadd.f32 %v1911_v60, %v1910_v57  ;;  %2213 = vmatprep.subr.bf16.mxu0 %v2697_v59 }
 0x1ff   :  { %2214 = vmatpush3.bf16.msra.mxu0 %v2697_v59 }
 0x200   :  { %v577_v63 = vadd.f32 %v1912_v4, %v2681_v62  ;;  %v618_v6 = vmax.f32 %v574_v61, 0.0 }
 0x202   :  { %v619_v0 = vmax.f32 %v577_v63, 0.0  ;;  %v1913_v1 = vpop.f32.mrb[32].mxu1 }
 0x203   :  { %v1914_v7 = vpop.f32.mrb[33].mxu1 }
 0x204   :  { %v1915_v8 = vadd.f32 %v1914_v7, %v1913_v1  ;;  %v1916_v12 = vpop.f32.mrb[34].mxu1  ;;  %v2703_v11 = vpack.c.bf16 %v619_v0, %v618_v6 }
 0x205   :  { %v1917_v15 = vpop.f32.mrb[35].mxu1 }
 0x206   :  { %v582_v13 = vadd.f32 %v1915_v8, %v2681_v62  ;;  %v1918_v14 = vadd.f32 %v1917_v15, %v1916_v12  ;;  %2215 = vmatprep.subr.bf16.mxu0 %v2703_v11 }
 0x207   :  { %2216 = vmatpush3.bf16.msra.mxu0 %v2703_v11 }
 0x208   :  { %v585_v16 = vadd.f32 %v1918_v14, %v2681_v62  ;;  %v620_v17 = vmax.f32 %v582_v13, 0.0 }
 0x20a   :  { %v621_v20 = vmax.f32 %v585_v16, 0.0  ;;  %v1919_v21 = vpop.f32.mrb[36].mxu1 }
 0x20b   :  { %v1920_v24 = vpop.f32.mrb[37].mxu1 }
 0x20c   :  { %v1921_v26 = vadd.f32 %v1920_v24, %v1919_v21  ;;  %v1922_v27 = vpop.f32.mrb[38].mxu1  ;;  %v2709_v29 = vpack.c.bf16 %v621_v20, %v620_v17  ;;  %v2343_v20 = vld [vmem:[#allocation2 + $0xc0] sm:$0xff]   ;;  %v2345_v24 = vld [vmem:[#allocation2 + $0xc8] sm:$0xff]  }
 0x20d   :  { %v1923_v2 = vpop.f32.mrb[39].mxu1  ;;  %v2344_v21 = vld [vmem:[#allocation2 + $0x80] sm:$0xff]  }
 0x20e   :  { %v590_v31 = vadd.f32 %v1921_v26, %v2681_v62  ;;  %v1924_v33 = vadd.f32 %v1923_v2, %v1922_v27  ;;  %2217 = vmatprep.subr.bf16.mxu0 %v2709_v29  ;;  %v2346_v26 = vld [vmem:[#allocation2 + $0x88] sm:$0xff]   ;;  %v2348_v27 = vld [vmem:[#allocation2 + $0x90] sm:$0xff]   ;;  %v2349_v2 = vld [vmem:[#allocation2 + $0xd8] sm:$0xff]  }
 0x20f   :  { %2218 = vmatpush3.bf16.msra.mxu0 %v2709_v29 }
 0x210   :  { %v593_v34 = vadd.f32 %v1924_v33, %v2681_v62  ;;  %v622_v37 = vmax.f32 %v590_v31, 0.0  ;;  %v2350_v31 = vld [vmem:[#allocation2 + $0x98] sm:$0xff]   ;;  %v2351_v33 = vld [vmem:[#allocation2 + $0xe0] sm:$0xff]  }
 0x212   :  { %v623_v38 = vmax.f32 %v593_v34, 0.0  ;;  %v1925_v41 = vpop.f32.mrb[40].mxu1  ;;  %v2354_v34 = vld [vmem:[#allocation2 + $0xa8] sm:$0xff]  }
 0x213   :  { %v1926_v42 = vpop.f32.mrb[41].mxu1 }
 0x214   :  { %v1927_v3 = vadd.f32 %v1926_v42, %v1925_v41  ;;  %v1928_v46 = vpop.f32.mrb[42].mxu1  ;;  %v2715_v47 = vpack.c.bf16 %v623_v38, %v622_v37  ;;  %v2357_v37 = vld [vmem:[#allocation2 + $0xf8] sm:$0xff]  }
 0x215   :  { %v1929_v48 = vpop.f32.mrb[43].mxu1  ;;  %v2358_v38 = vld [vmem:[#allocation2 + $0xb8] sm:$0xff]  }
 0x216   :  { %v598_v55 = vadd.f32 %v1927_v3, %v2681_v62  ;;  %v1930_v57 = vadd.f32 %v1929_v48, %v1928_v46  ;;  %2219 = vmatprep.subr.bf16.mxu0 %v2715_v47 }
 0x217   :  { %2220 = vmatpush3.bf16.msra.mxu0 %v2715_v47 }
 0x218   :  { %v601_v60 = vadd.f32 %v1930_v57, %v2681_v62  ;;  %v624_v61 = vmax.f32 %v598_v55, 0.0 }
 0x21a   :  { %v625_v4 = vmax.f32 %v601_v60, 0.0  ;;  %v1931_v63 = vpop.f32.mrb[44].mxu1 }
 0x21b   :  { %v1932_v6 = vpop.f32.mrb[45].mxu1 }
 0x21c   :  { %v1933_v0 = vadd.f32 %v1932_v6, %v1931_v63  ;;  %v1934_v1 = vpop.f32.mrb[46].mxu1  ;;  %v2721_v7 = vpack.c.bf16 %v625_v4, %v624_v61 }
 0x21d   :  { %v1935_v8 = vpop.f32.mrb[47].mxu1 }
 0x21e   :  { %v606_v12 = vadd.f32 %v1933_v0, %v2681_v62  ;;  %v1936_v15 = vadd.f32 %v1935_v8, %v1934_v1  ;;  %2221 = vmatprep.subr.bf16.mxu0 %v2721_v7 }
 0x21f   :  { %2222 = vmatpush3.bf16.msra.mxu0 %v2721_v7 }
 0x220   :  { %v609_v13 = vadd.f32 %v1936_v15, %v2681_v62  ;;  %v626_v14 = vmax.f32 %v606_v12, 0.0  ;;  %v2347_v62 = vld [vmem:[#allocation2 + $0xd0] sm:$0xff]  }
 0x222   :  { %v627_v16 = vmax.f32 %v609_v13, 0.0 }
 0x224   :  { %v2727_v17 = vpack.c.bf16 %v627_v16, %v626_v14 }
 0x226   :  { %2223 = vmatprep.subr.bf16.mxu0 %v2727_v17 }
 0x227   :  { %2224 = vmatpush3.bf16.msra.mxu0 %v2727_v17 }
 0x228   :  { %1953 = vmatprep.subr.bf16.mxu0 %v2343_v20 }
 0x22a   :  { %2226 = vmatmul.mubr.bf16.vlgmr.msra.gmra.mrb[0].mxu0 %v2557_v18  ;;  %v2352_v18 = vld [vmem:[#allocation2 + $0xa0] sm:$0xff]  }
 0x22b   :  { %2229 = vmatprep.mubr.bf16.mxu0 %v2568_v22  ;;  %1954 = vmatpush3.bf16.msra.mxu0 %v2344_v21  ;;  %v2353_v22 = vld [vmem:[#allocation2 + $0xe8] sm:$0xff]  }
 0x22c   :  { %1955 = vmatprep.subr.bf16.mxu0 %v2345_v24 }
 0x22f   :  { %1956 = vmatpush3.bf16.msra.mxu0 %v2346_v26 }
 0x230   :  { %1957 = vmatprep.subr.bf16.mxu0 %v2347_v62 }
 0x232   :  { %2230 = vmatmul.mubr.bf16.gmra.mrb[4].mxu0 %v2582_v28  ;;  %v2355_v28 = vld [vmem:[#allocation2 + $0xf0] sm:$0xff]  }
 0x233   :  { %2233 = vmatprep.mubr.bf16.mxu0 %v2593_v32  ;;  %1958 = vmatpush3.bf16.msra.mxu0 %v2348_v27  ;;  %v2356_v32 = vld [vmem:[#allocation2 + $0xb0] sm:$0xff]  }
 0x234   :  { %1959 = vmatprep.subr.bf16.mxu0 %v2349_v2 }
 0x237   :  { %1960 = vmatpush3.bf16.msra.mxu0 %v2350_v31 }
 0x238   :  { %1961 = vmatprep.subr.bf16.mxu0 %v2351_v33 }
 0x23a   :  { %2234 = vmatmul.mubr.bf16.gmra.mrb[8].mxu0 %v2606_v39 }
 0x23b   :  { %2237 = vmatprep.mubr.bf16.mxu0 %v2611_v40  ;;  %1962 = vmatpush3.bf16.msra.mxu0 %v2352_v18 }
 0x23c   :  { %1963 = vmatprep.subr.bf16.mxu0 %v2353_v22 }
 0x23f   :  { %1964 = vmatpush3.bf16.msra.mxu0 %v2354_v34 }
 0x240   :  { %1965 = vmatprep.subr.bf16.mxu0 %v2355_v28 }
 0x242   :  { %2238 = vmatmul.mubr.bf16.gmra.mrb[12].mxu0 %v2618_v44 }
 0x243   :  { %926 = vmatprep.mubr.bf16.mxu0 %v2685_v19  ;;  %1966 = vmatpush3.bf16.msra.mxu0 %v2356_v32 }
 0x244   :  { %1967 = vmatprep.subr.bf16.mxu0 %v2357_v37 }
 0x247   :  { %1968 = vmatpush3.bf16.msra.mxu0 %v2358_v38 }
 0x2fd   :  { %v2227_v41 = vpop.f32.mrb[0].mxu0 }
 0x2fe   :  { %v670_v42 = vpop.f32.mrb[1].mxu0  ;;  %v735_v46 = vmul.f32 %v2227_v41, %v2624_v50 }
 0x2ff   :  { %v2228_v3 = vpop.f32.mrb[2].mxu0  ;;  %v733_v57 = vmul.f32 %v670_v42, %v2622_v49  ;;  %v2766_v42 = vld [vmem:[%s3030_s4 + $0x1] ss:$0 sm:$0xff] }
 0x300   :  { %v736_v48 = vmul.f32 %v2228_v3, %v2628_v52  ;;  %v673_v55 = vpop.f32.mrb[3].mxu0 }
 0x301   :  { %v734_v19 = vmul.f32 %v673_v55, %v2626_v51 }
 0x302   :  { %v750_v60 = vpack.c.bf16 %v736_v48, %v735_v46 }
 0x303   :  { %v749_v61 = vpack.c.bf16 %v734_v19, %v733_v57 }
 0x305   :  { %v2231_v4 = vpop.f32.mrb[4].mxu0  ;;  %927 = vmatmul.mubr.bf16.vlgmr.msra.gmra.mrb[16].mxu0 %v749_v61 }
 0x306   :  { %v686_v63 = vpop.f32.mrb[5].mxu0  ;;  %934 = vmatprep.mubr.bf16.mxu0 %v2691_v36  ;;  %v739_v0 = vmul.f32 %v2231_v4, %v2634_v56 }
 0x307   :  { %v2232_v6 = vpop.f32.mrb[6].mxu0  ;;  %v737_v12 = vmul.f32 %v686_v63, %v2630_v53 }
 0x308   :  { %v740_v1 = vmul.f32 %v2232_v6, %v2636_v58  ;;  %v689_v8 = vpop.f32.mrb[7].mxu0 }
 0x309   :  { %v738_v15 = vmul.f32 %v689_v8, %v2632_v54 }
 0x30a   :  { %v752_v13 = vpack.c.bf16 %v740_v1, %v739_v0 }
 0x30b   :  { %v751_v14 = vpack.c.bf16 %v738_v15, %v737_v12 }
 0x30d   :  { %v2235_v16 = vpop.f32.mrb[8].mxu0  ;;  %935 = vmatmul.mubr.bf16.gmra.mrb[20].mxu0 %v750_v60 }
 0x30e   :  { %v702_v20 = vpop.f32.mrb[9].mxu0  ;;  %942 = vmatprep.mubr.bf16.mxu0 %v2697_v59  ;;  %v743_v36 = vmul.f32 %v2235_v16, %v2651_v23 }
 0x30f   :  { %v2236_v21 = vpop.f32.mrb[10].mxu0  ;;  %v741_v62 = vmul.f32 %v702_v20, %v2642_v9 }
 0x310   :  { %v744_v24 = vmul.f32 %v2236_v21, %v2653_v25  ;;  %v705_v26 = vpop.f32.mrb[11].mxu0 }
 0x311   :  { %v742_v27 = vmul.f32 %v705_v26, %v2644_v10 }
 0x312   :  { %v754_v2 = vpack.c.bf16 %v744_v24, %v743_v36 }
 0x313   :  { %v753_v31 = vpack.c.bf16 %v742_v27, %v741_v62 }
 0x315   :  { %v2239_v33 = vpop.f32.mrb[12].mxu0  ;;  %943 = vmatmul.mubr.bf16.gmra.mrb[24].mxu0 %v751_v14 }
 0x316   :  { %v718_v18 = vpop.f32.mrb[13].mxu0  ;;  %950 = vmatprep.mubr.bf16.mxu0 %v2703_v11  ;;  %v747_v59 = vmul.f32 %v2239_v33, %v2664_v43 }
 0x317   :  { %v2240_v22 = vpop.f32.mrb[14].mxu0  ;;  %v745_v32 = vmul.f32 %v718_v18, %v2656_v30 }
 0x318   :  { %v748_v34 = vmul.f32 %v2240_v22, %v2667_v45  ;;  %v721_v28 = vpop.f32.mrb[15].mxu0 }
 0x319   :  { %v746_v37 = vmul.f32 %v721_v28, %v2660_v35 }
 0x31a   :  { %v756_v38 = vpack.c.bf16 %v748_v34, %v747_v59 }
 0x31b   :  { %v755_v41 = vpack.c.bf16 %v746_v37, %v745_v32 }
 0x31d   :  { %951 = vmatmul.mubr.bf16.gmra.mrb[28].mxu0 %v752_v13 }
 0x31e   :  { %958 = vmatprep.mubr.bf16.mxu0 %v2709_v29 }
 0x325   :  { %959 = vmatmul.mubr.bf16.gmra.mrb[32].mxu0 %v753_v31 }
 0x326   :  { %966 = vmatprep.mubr.bf16.mxu0 %v2715_v47 }
 0x32d   :  { %967 = vmatmul.mubr.bf16.gmra.mrb[36].mxu0 %v754_v2 }
 0x32e   :  { %974 = vmatprep.mubr.bf16.mxu0 %v2721_v7 }
 0x335   :  { %975 = vmatmul.mubr.bf16.gmra.mrb[40].mxu0 %v755_v41 }
 0x336   :  { %982 = vmatprep.mubr.bf16.mxu0 %v2727_v17 }
 0x33d   :  { %983 = vmatmul.mubr.bf16.gmra.mrb[44].mxu0 %v756_v38 }
 0x33e   :  { %2289 = vmatprep.mubr.bf16.mxu0 %v2496_v5 }
 0x3d8   :  { %v1969_v11 = vpop.f32.mrb[16].mxu0 }
 0x3d9   :  { %v1970_v3 = vpop.f32.mrb[17].mxu0 }
 0x3da   :  { %v1971_v29 = vadd.f32 %v1970_v3, %v1969_v11  ;;  %v1972_v46 = vpop.f32.mrb[18].mxu0 }
 0x3db   :  { %v1973_v48 = vpop.f32.mrb[19].mxu0 }
 0x3dc   :  { %v929_v47 = vadd.f32 %v1971_v29, %v2766_v42  ;;  %v1974_v55 = vadd.f32 %v1973_v48, %v1972_v46 }
 0x3de   :  { %v932_v7 = vadd.f32 %v1974_v55, %v2766_v42  ;;  %v991_v57 = vmax.f32 %v929_v47, 0.0 }
 0x3e0   :  { %v992_v17 = vmax.f32 %v932_v7, 0.0  ;;  %v1975_v19 = vpop.f32.mrb[20].mxu0 }
 0x3e1   :  { %v1976_v60 = vpop.f32.mrb[21].mxu0 }
 0x3e2   :  { %v1977_v5 = vadd.f32 %v1976_v60, %v1975_v19  ;;  %v1978_v61 = vpop.f32.mrb[22].mxu0  ;;  %v2770_v4 = vpack.c.bf16 %v992_v17, %v991_v57 }
 0x3e3   :  { %v1979_v63 = vpop.f32.mrb[23].mxu0 }
 0x3e4   :  { %v937_v6 = vadd.f32 %v1977_v5, %v2766_v42  ;;  %v1980_v0 = vadd.f32 %v1979_v63, %v1978_v61  ;;  %2241 = vmatprep.subr.bf16.mxu1 %v2770_v4 }
 0x3e5   :  { %2242 = vmatpush3.bf16.msra.mxu1 %v2770_v4 }
 0x3e6   :  { %v940_v1 = vadd.f32 %v1980_v0, %v2766_v42  ;;  %v993_v8 = vmax.f32 %v937_v6, 0.0 }
 0x3e8   :  { %v994_v12 = vmax.f32 %v940_v1, 0.0  ;;  %v1981_v15 = vpop.f32.mrb[24].mxu0 }
 0x3e9   :  { %v1982_v13 = vpop.f32.mrb[25].mxu0 }
 0x3ea   :  { %v1983_v14 = vadd.f32 %v1982_v13, %v1981_v15  ;;  %v1984_v16 = vpop.f32.mrb[26].mxu0  ;;  %v2776_v20 = vpack.c.bf16 %v994_v12, %v993_v8 }
 0x3eb   :  { %v1985_v21 = vpop.f32.mrb[27].mxu0 }
 0x3ec   :  { %v945_v36 = vadd.f32 %v1983_v14, %v2766_v42  ;;  %v1986_v24 = vadd.f32 %v1985_v21, %v1984_v16  ;;  %2243 = vmatprep.subr.bf16.mxu1 %v2776_v20 }
 0x3ed   :  { %2244 = vmatpush3.bf16.msra.mxu1 %v2776_v20 }
 0x3ee   :  { %v948_v26 = vadd.f32 %v1986_v24, %v2766_v42  ;;  %v995_v62 = vmax.f32 %v945_v36, 0.0 }
 0x3f0   :  { %v996_v27 = vmax.f32 %v948_v26, 0.0  ;;  %v1987_v2 = vpop.f32.mrb[28].mxu0 }
 0x3f1   :  { %v1988_v31 = vpop.f32.mrb[29].mxu0 }
 0x3f2   :  { %v1989_v33 = vadd.f32 %v1988_v31, %v1987_v2  ;;  %v1990_v18 = vpop.f32.mrb[30].mxu0  ;;  %v2782_v22 = vpack.c.bf16 %v996_v27, %v995_v62 }
 0x3f3   :  { %v1991_v59 = vpop.f32.mrb[31].mxu0 }
 0x3f4   :  { %v953_v34 = vadd.f32 %v1989_v33, %v2766_v42  ;;  %v1992_v28 = vadd.f32 %v1991_v59, %v1990_v18  ;;  %2245 = vmatprep.subr.bf16.mxu1 %v2782_v22 }
 0x3f5   :  { %2246 = vmatpush3.bf16.msra.mxu1 %v2782_v22 }
 0x3f6   :  { %v956_v32 = vadd.f32 %v1992_v28, %v2766_v42  ;;  %v997_v37 = vmax.f32 %v953_v34, 0.0 }
 0x3f8   :  { %v998_v38 = vmax.f32 %v956_v32, 0.0  ;;  %v1993_v41 = vpop.f32.mrb[32].mxu0 }
 0x3f9   :  { %v1994_v11 = vpop.f32.mrb[33].mxu0 }
 0x3fa   :  { %v1995_v3 = vadd.f32 %v1994_v11, %v1993_v41  ;;  %v1996_v29 = vpop.f32.mrb[34].mxu0  ;;  %v2788_v46 = vpack.c.bf16 %v998_v38, %v997_v37 }
 0x3fb   :  { %v1997_v48 = vpop.f32.mrb[35].mxu0 }
 0x3fc   :  { %v961_v47 = vadd.f32 %v1995_v3, %v2766_v42  ;;  %v1998_v55 = vadd.f32 %v1997_v48, %v1996_v29  ;;  %2247 = vmatprep.subr.bf16.mxu1 %v2788_v46  ;;  %v2359_v48 = vld [vmem:[#allocation2 + $0x140] sm:$0xff]  }
 0x3fd   :  { %2248 = vmatpush3.bf16.msra.mxu1 %v2788_v46 }
 0x3fe   :  { %v964_v7 = vadd.f32 %v1998_v55, %v2766_v42  ;;  %v999_v57 = vmax.f32 %v961_v47, 0.0  ;;  %v2360_v47 = vld [vmem:[#allocation2 + $0x100] sm:$0xff]   ;;  %v2361_v55 = vld [vmem:[#allocation2 + $0x148] sm:$0xff]  }
 0x400   :  { %v1000_v17 = vmax.f32 %v964_v7, 0.0  ;;  %v1999_v19 = vpop.f32.mrb[36].mxu0  ;;  %v2819_v7 = vld [vmem:[%s3026_s0 + $0x8] sm:$0xff]  }
 0x401   :  { %v2000_v60 = vpop.f32.mrb[37].mxu0 }
 0x402   :  { %v2001_v5 = vadd.f32 %v2000_v60, %v1999_v19  ;;  %v2002_v61 = vpop.f32.mrb[38].mxu0  ;;  %v2794_v63 = vpack.c.bf16 %v1000_v17, %v999_v57  ;;  %v2362_v57 = vld [vmem:[#allocation2 + $0x108] sm:$0xff]   ;;  %v2363_v17 = vld [vmem:[#allocation2 + $0x150] sm:$0xff]   ;;  %v2365_v60 = vld [vmem:[#allocation2 + $0x158] sm:$0xff]  }
 0x403   :  { %v2003_v6 = vpop.f32.mrb[39].mxu0  ;;  %v2364_v19 = vld [vmem:[#allocation2 + $0x110] sm:$0xff]  }
 0x404   :  { %v969_v0 = vadd.f32 %v2001_v5, %v2766_v42  ;;  %v2004_v1 = vadd.f32 %v2003_v6, %v2002_v61  ;;  %2249 = vmatprep.subr.bf16.mxu1 %v2794_v63  ;;  %v2831_v5 = vld [vmem:[%s3026_s0 + $0x18] sm:$0xff]   ;;  %v2837_v61 = vld [vmem:[%s3026_s0 + $0x20] sm:$0xff]  }
 0x405   :  { %2250 = vmatpush3.bf16.msra.mxu1 %v2794_v63  ;;  %v2366_v6 = vld [vmem:[#allocation2 + $0x118] sm:$0xff]  }
 0x406   :  { %v972_v8 = vadd.f32 %v2004_v1, %v2766_v42  ;;  %v1001_v12 = vmax.f32 %v969_v0, 0.0  ;;  %v2367_v0 = vld [vmem:[#allocation2 + $0x160] sm:$0xff]  }
 0x407   :  { %v2368_v1 = vld [vmem:[#allocation2 + $0x120] sm:$0xff]  }
 0x408   :  { %v1002_v15 = vmax.f32 %v972_v8, 0.0  ;;  %v2005_v13 = vpop.f32.mrb[40].mxu0  ;;  %v2369_v8 = vld [vmem:[#allocation2 + $0x168] sm:$0xff]  }
 0x409   :  { %v2006_v14 = vpop.f32.mrb[41].mxu0 }
 0x40a   :  { %v2007_v16 = vadd.f32 %v2006_v14, %v2005_v13  ;;  %v2008_v21 = vpop.f32.mrb[42].mxu0  ;;  %v2800_v36 = vpack.c.bf16 %v1002_v15, %v1001_v12  ;;  %v2370_v12 = vld [vmem:[#allocation2 + $0x128] sm:$0xff]   ;;  %v2371_v15 = vld [vmem:[#allocation2 + $0x170] sm:$0xff]   ;;  %v2373_v14 = vld [vmem:[#allocation2 + $0x178] sm:$0xff]  }
 0x40b   :  { %v2009_v24 = vpop.f32.mrb[43].mxu0  ;;  %v2372_v13 = vld [vmem:[#allocation2 + $0x130] sm:$0xff]  }
 0x40c   :  { %v977_v26 = vadd.f32 %v2007_v16, %v2766_v42  ;;  %v2010_v62 = vadd.f32 %v2009_v24, %v2008_v21  ;;  %2251 = vmatprep.subr.bf16.mxu1 %v2800_v36  ;;  %v2374_v16 = vld [vmem:[#allocation2 + $0x138] sm:$0xff]  }
 0x40d   :  { %2252 = vmatpush3.bf16.msra.mxu1 %v2800_v36 }
 0x40e   :  { %v980_v27 = vadd.f32 %v2010_v62, %v2766_v42  ;;  %v1003_v2 = vmax.f32 %v977_v26, 0.0 }
 0x410   :  { %v1004_v31 = vmax.f32 %v980_v27, 0.0  ;;  %v2011_v33 = vpop.f32.mrb[44].mxu0 }
 0x411   :  { %v2012_v18 = vpop.f32.mrb[45].mxu0 }
 0x412   :  { %v2013_v59 = vadd.f32 %v2012_v18, %v2011_v33  ;;  %v2014_v34 = vpop.f32.mrb[46].mxu0  ;;  %v2806_v28 = vpack.c.bf16 %v1004_v31, %v1003_v2 }
 0x413   :  { %v2015_v32 = vpop.f32.mrb[47].mxu0 }
 0x414   :  { %v985_v37 = vadd.f32 %v2013_v59, %v2766_v42  ;;  %v2016_v38 = vadd.f32 %v2015_v32, %v2014_v34  ;;  %2253 = vmatprep.subr.bf16.mxu1 %v2806_v28 }
 0x415   :  { %2254 = vmatpush3.bf16.msra.mxu1 %v2806_v28 }
 0x416   :  { %v988_v41 = vadd.f32 %v2016_v38, %v2766_v42  ;;  %v1005_v11 = vmax.f32 %v985_v37, 0.0  ;;  %v2825_v42 = vld [vmem:[%s3026_s0 + $0x10] sm:$0xff]  }
 0x418   :  { %v1006_v3 = vmax.f32 %v988_v41, 0.0 }
 0x41a   :  { %v2812_v29 = vpack.c.bf16 %v1006_v3, %v1005_v11 }
 0x41c   :  { %2255 = vmatprep.subr.bf16.mxu1 %v2812_v29 }
 0x41d   :  { %2256 = vmatpush3.bf16.msra.mxu1 %v2812_v29 }
 0x41e   :  { %2033 = vmatprep.subr.bf16.mxu1 %v2359_v48 }
 0x420   :  { %2258 = vmatmul.mubr.bf16.vlgmr.msra.gmra.mrb[48].mxu1 %v2819_v7 }
 0x421   :  { %2261 = vmatprep.mubr.bf16.mxu1 %v2825_v42  ;;  %2034 = vmatpush3.bf16.msra.mxu1 %v2360_v47 }
 0x422   :  { %2035 = vmatprep.subr.bf16.mxu1 %v2361_v55 }
 0x425   :  { %2036 = vmatpush3.bf16.msra.mxu1 %v2362_v57 }
 0x426   :  { %2037 = vmatprep.subr.bf16.mxu1 %v2363_v17 }
 0x428   :  { %2262 = vmatmul.mubr.bf16.gmra.mrb[52].mxu1 %v2831_v5 }
 0x429   :  { %2265 = vmatprep.mubr.bf16.mxu1 %v2837_v61  ;;  %2038 = vmatpush3.bf16.msra.mxu1 %v2364_v19 }
 0x42a   :  { %2039 = vmatprep.subr.bf16.mxu1 %v2365_v60 }
 0x42d   :  { %2040 = vmatpush3.bf16.msra.mxu1 %v2366_v6 }
 0x42e   :  { %2041 = vmatprep.subr.bf16.mxu1 %v2367_v0 }
 0x430   :  { %2266 = vmatmul.mubr.bf16.gmra.mrb[56].mxu1 %v2606_v39 }
 0x431   :  { %2269 = vmatprep.mubr.bf16.mxu1 %v2611_v40  ;;  %2042 = vmatpush3.bf16.msra.mxu1 %v2368_v1 }
 0x432   :  { %2043 = vmatprep.subr.bf16.mxu1 %v2369_v8 }
 0x435   :  { %2044 = vmatpush3.bf16.msra.mxu1 %v2370_v12 }
 0x436   :  { %2045 = vmatprep.subr.bf16.mxu1 %v2371_v15 }
 0x438   :  { %2270 = vmatmul.mubr.bf16.gmra.mrb[60].mxu1 %v2618_v44 }
 0x439   :  { %1305 = vmatprep.mubr.bf16.mxu1 %v2770_v4  ;;  %2046 = vmatpush3.bf16.msra.mxu1 %v2372_v13 }
 0x43a   :  { %2047 = vmatprep.subr.bf16.mxu1 %v2373_v14 }
 0x43d   :  { %2048 = vmatpush3.bf16.msra.mxu1 %v2374_v16 }
 0x4f3   :  { %v2259_v21 = vpop.f32.mrb[48].mxu1 }
 0x4f4   :  { %v1049_v39 = vpop.f32.mrb[49].mxu1  ;;  %v1114_v40 = vmul.f32 %v2259_v21, %v2624_v50 }
 0x4f5   :  { %v2260_v24 = vpop.f32.mrb[50].mxu1  ;;  %v1112_v44 = vmul.f32 %v1049_v39, %v2622_v49  ;;  %v2870_v39 = vld [vmem:[%s3030_s4 + $0x2] ss:$0 sm:$0xff] }
 0x4f6   :  { %v1115_v26 = vmul.f32 %v2260_v24, %v2628_v52  ;;  %v1052_v62 = vpop.f32.mrb[51].mxu1 }
 0x4f7   :  { %v1113_v4 = vmul.f32 %v1052_v62, %v2626_v51 }
 0x4f8   :  { %v1129_v27 = vpack.c.bf16 %v1115_v26, %v1114_v40 }
 0x4f9   :  { %v1128_v2 = vpack.c.bf16 %v1113_v4, %v1112_v44 }
 0x4fb   :  { %v2263_v31 = vpop.f32.mrb[52].mxu1  ;;  %1306 = vmatmul.mubr.bf16.vlgmr.msra.gmra.mrb[64].mxu1 %v1128_v2 }
 0x4fc   :  { %v1065_v33 = vpop.f32.mrb[53].mxu1  ;;  %1313 = vmatprep.mubr.bf16.mxu1 %v2776_v20  ;;  %v1118_v59 = vmul.f32 %v2263_v31, %v2634_v56 }
 0x4fd   :  { %v2264_v18 = vpop.f32.mrb[54].mxu1  ;;  %v1116_v37 = vmul.f32 %v1065_v33, %v2630_v53 }
 0x4fe   :  { %v1119_v34 = vmul.f32 %v2264_v18, %v2636_v58  ;;  %v1068_v32 = vpop.f32.mrb[55].mxu1 }
 0x4ff   :  { %v1117_v38 = vmul.f32 %v1068_v32, %v2632_v54 }
 0x500   :  { %v1131_v41 = vpack.c.bf16 %v1119_v34, %v1118_v59 }
 0x501   :  { %v1130_v11 = vpack.c.bf16 %v1117_v38, %v1116_v37 }
 0x503   :  { %v2267_v3 = vpop.f32.mrb[56].mxu1  ;;  %1314 = vmatmul.mubr.bf16.gmra.mrb[68].mxu1 %v1129_v27 }
 0x504   :  { %v1081_v48 = vpop.f32.mrb[57].mxu1  ;;  %1321 = vmatprep.mubr.bf16.mxu1 %v2782_v22  ;;  %v1122_v20 = vmul.f32 %v2267_v3, %v2651_v23 }
 0x505   :  { %v2268_v47 = vpop.f32.mrb[58].mxu1  ;;  %v1120_v17 = vmul.f32 %v1081_v48, %v2642_v9 }
 0x506   :  { %v1123_v55 = vmul.f32 %v2268_v47, %v2653_v25  ;;  %v1084_v57 = vpop.f32.mrb[59].mxu1 }
 0x507   :  { %v1121_v19 = vmul.f32 %v1084_v57, %v2644_v10 }
 0x508   :  { %v1133_v60 = vpack.c.bf16 %v1123_v55, %v1122_v20 }
 0x509   :  { %v1132_v6 = vpack.c.bf16 %v1121_v19, %v1120_v17 }
 0x50b   :  { %v2271_v0 = vpop.f32.mrb[60].mxu1  ;;  %1322 = vmatmul.mubr.bf16.gmra.mrb[72].mxu1 %v1130_v11 }
 0x50c   :  { %v1097_v1 = vpop.f32.mrb[61].mxu1  ;;  %1329 = vmatprep.mubr.bf16.mxu1 %v2788_v46  ;;  %v1126_v22 = vmul.f32 %v2271_v0, %v2664_v43 }
 0x50d   :  { %v2272_v8 = vpop.f32.mrb[62].mxu1  ;;  %v1124_v13 = vmul.f32 %v1097_v1, %v2656_v30 }
 0x50e   :  { %v1127_v12 = vmul.f32 %v2272_v8, %v2667_v45  ;;  %v1100_v15 = vpop.f32.mrb[63].mxu1 }
 0x50f   :  { %v1125_v14 = vmul.f32 %v1100_v15, %v2660_v35 }
 0x510   :  { %v1135_v16 = vpack.c.bf16 %v1127_v12, %v1126_v22 }
 0x511   :  { %v1134_v21 = vpack.c.bf16 %v1125_v14, %v1124_v13 }
 0x513   :  { %1330 = vmatmul.mubr.bf16.gmra.mrb[76].mxu1 %v1131_v41 }
 0x514   :  { %1337 = vmatprep.mubr.bf16.mxu1 %v2794_v63 }
 0x51b   :  { %1338 = vmatmul.mubr.bf16.gmra.mrb[80].mxu1 %v1132_v6 }
 0x51c   :  { %1345 = vmatprep.mubr.bf16.mxu1 %v2800_v36 }
 0x523   :  { %1346 = vmatmul.mubr.bf16.gmra.mrb[84].mxu1 %v1133_v60 }
 0x524   :  { %1353 = vmatprep.mubr.bf16.mxu1 %v2806_v28 }
 0x52b   :  { %1354 = vmatmul.mubr.bf16.gmra.mrb[88].mxu1 %v1134_v21 }
 0x52c   :  { %1361 = vmatprep.mubr.bf16.mxu1 %v2812_v29 }
 0x533   :  { %1362 = vmatmul.mubr.bf16.gmra.mrb[92].mxu1 %v1135_v16 }
 0x5ce   :  { %v2049_v46 = vpop.f32.mrb[64].mxu1 }
 0x5cf   :  { %v2050_v24 = vpop.f32.mrb[65].mxu1 }
 0x5d0   :  { %v2051_v40 = vadd.f32 %v2050_v24, %v2049_v46  ;;  %v2052_v26 = vpop.f32.mrb[66].mxu1 }
 0x5d1   :  { %v2053_v63 = vpop.f32.mrb[67].mxu1 }
 0x5d2   :  { %v1308_v62 = vadd.f32 %v2051_v40, %v2870_v39  ;;  %v2054_v36 = vadd.f32 %v2053_v63, %v2052_v26 }
 0x5d4   :  { %v1311_v44 = vadd.f32 %v2054_v36, %v2870_v39  ;;  %v1370_v28 = vmax.f32 %v1308_v62, 0.0 }
 0x5d6   :  { %v1371_v4 = vmax.f32 %v1311_v44, 0.0  ;;  %v2055_v27 = vpop.f32.mrb[68].mxu1 }
 0x5d7   :  { %v2056_v29 = vpop.f32.mrb[69].mxu1 }
 0x5d8   :  { %v2057_v2 = vadd.f32 %v2056_v29, %v2055_v27  ;;  %v2058_v31 = vpop.f32.mrb[70].mxu1  ;;  %v2874_v33 = vpack.c.bf16 %v1371_v4, %v1370_v28 }
 0x5d9   :  { %v2059_v18 = vpop.f32.mrb[71].mxu1 }
 0x5da   :  { %v1316_v59 = vadd.f32 %v2057_v2, %v2870_v39  ;;  %v2060_v34 = vadd.f32 %v2059_v18, %v2058_v31  ;;  %2273 = vmatprep.subr.bf16.mxu0 %v2874_v33 }
 0x5db   :  { %2274 = vmatpush3.bf16.msra.mxu0 %v2874_v33 }
 0x5dc   :  { %v1319_v32 = vadd.f32 %v2060_v34, %v2870_v39  ;;  %v1372_v37 = vmax.f32 %v1316_v59, 0.0 }
 0x5de   :  { %v1373_v38 = vmax.f32 %v1319_v32, 0.0  ;;  %v2061_v41 = vpop.f32.mrb[72].mxu1 }
 0x5df   :  { %v2062_v11 = vpop.f32.mrb[73].mxu1 }
 0x5e0   :  { %v2063_v3 = vadd.f32 %v2062_v11, %v2061_v41  ;;  %v2064_v48 = vpop.f32.mrb[74].mxu1  ;;  %v2880_v47 = vpack.c.bf16 %v1373_v38, %v1372_v37 }
 0x5e1   :  { %v2065_v20 = vpop.f32.mrb[75].mxu1 }
 0x5e2   :  { %v1324_v55 = vadd.f32 %v2063_v3, %v2870_v39  ;;  %v2066_v57 = vadd.f32 %v2065_v20, %v2064_v48  ;;  %2275 = vmatprep.subr.bf16.mxu0 %v2880_v47 }
 0x5e3   :  { %2276 = vmatpush3.bf16.msra.mxu0 %v2880_v47 }
 0x5e4   :  { %v1327_v17 = vadd.f32 %v2066_v57, %v2870_v39  ;;  %v1374_v19 = vmax.f32 %v1324_v55, 0.0 }
 0x5e6   :  { %v1375_v60 = vmax.f32 %v1327_v17, 0.0  ;;  %v2067_v6 = vpop.f32.mrb[76].mxu1 }
 0x5e7   :  { %v2068_v0 = vpop.f32.mrb[77].mxu1 }
 0x5e8   :  { %v2069_v1 = vadd.f32 %v2068_v0, %v2067_v6  ;;  %v2070_v8 = vpop.f32.mrb[78].mxu1  ;;  %v2886_v22 = vpack.c.bf16 %v1375_v60, %v1374_v19 }
 0x5e9   :  { %v2071_v12 = vpop.f32.mrb[79].mxu1 }
 0x5ea   :  { %v1332_v15 = vadd.f32 %v2069_v1, %v2870_v39  ;;  %v2072_v13 = vadd.f32 %v2071_v12, %v2070_v8  ;;  %2277 = vmatprep.subr.bf16.mxu0 %v2886_v22 }
 0x5eb   :  { %2278 = vmatpush3.bf16.msra.mxu0 %v2886_v22 }
 0x5ec   :  { %v1335_v14 = vadd.f32 %v2072_v13, %v2870_v39  ;;  %v1376_v16 = vmax.f32 %v1332_v15, 0.0 }
 0x5ee   :  { %v1377_v21 = vmax.f32 %v1335_v14, 0.0  ;;  %v2073_v46 = vpop.f32.mrb[80].mxu1 }
 0x5ef   :  { %v2074_v24 = vpop.f32.mrb[81].mxu1 }
 0x5f0   :  { %v2075_v40 = vadd.f32 %v2074_v24, %v2073_v46  ;;  %v2076_v26 = vpop.f32.mrb[82].mxu1  ;;  %v2892_v63 = vpack.c.bf16 %v1377_v21, %v1376_v16 }
 0x5f1   :  { %v2077_v62 = vpop.f32.mrb[83].mxu1 }
 0x5f2   :  { %v1340_v36 = vadd.f32 %v2075_v40, %v2870_v39  ;;  %v2078_v44 = vadd.f32 %v2077_v62, %v2076_v26  ;;  %2279 = vmatprep.subr.bf16.mxu0 %v2892_v63 }
 0x5f3   :  { %2280 = vmatpush3.bf16.msra.mxu0 %v2892_v63 }
 0x5f4   :  { %v1343_v28 = vadd.f32 %v2078_v44, %v2870_v39  ;;  %v1378_v4 = vmax.f32 %v1340_v36, 0.0  ;;  %v2375_v36 = vld [vmem:[#allocation2 + $0x1c0] sm:$0xff]  }
 0x5f5   :  { %v2376_v44 = vld [vmem:[#allocation2 + $0x180] sm:$0xff]  }
 0x5f6   :  { %v1379_v27 = vmax.f32 %v1343_v28, 0.0  ;;  %v2079_v29 = vpop.f32.mrb[84].mxu1  ;;  %v2377_v28 = vld [vmem:[#allocation2 + $0x1c8] sm:$0xff]  }
 0x5f7   :  { %v2080_v2 = vpop.f32.mrb[85].mxu1 }
 0x5f8   :  { %v2081_v31 = vadd.f32 %v2080_v2, %v2079_v29  ;;  %v2082_v18 = vpop.f32.mrb[86].mxu1  ;;  %v2898_v59 = vpack.c.bf16 %v1379_v27, %v1378_v4  ;;  %v2378_v4 = vld [vmem:[#allocation2 + $0x188] sm:$0xff]   ;;  %v2380_v27 = vld [vmem:[#allocation2 + $0x190] sm:$0xff]   ;;  %v2381_v29 = vld [vmem:[#allocation2 + $0x1d8] sm:$0xff]  }
 0x5f9   :  { %v2083_v34 = vpop.f32.mrb[87].mxu1  ;;  %v2382_v2 = vld [vmem:[#allocation2 + $0x198] sm:$0xff]  }
 0x5fa   :  { %v1348_v32 = vadd.f32 %v2081_v31, %v2870_v39  ;;  %v2084_v37 = vadd.f32 %v2083_v34, %v2082_v18  ;;  %2281 = vmatprep.subr.bf16.mxu0 %v2898_v59  ;;  %v2383_v31 = vld [vmem:[#allocation2 + $0x1e0] sm:$0xff]   ;;  %v2395_v18 = vld [vmem:[%s3026_s0 + $0x28] sm:$0xff]   ;;  %v2396_v34 = vld [vmem:[%s3026_s0 + $0x30] sm:$0xff]  }
 0x5fb   :  { %2282 = vmatpush3.bf16.msra.mxu0 %v2898_v59 }
 0x5fc   :  { %v1351_v38 = vadd.f32 %v2084_v37, %v2870_v39  ;;  %v1380_v41 = vmax.f32 %v1348_v32, 0.0  ;;  %v2387_v32 = vld [vmem:[#allocation2 + $0x1f0] sm:$0xff]  }
 0x5fd   :  { %v2388_v37 = vld [vmem:[#allocation2 + $0x1b0] sm:$0xff]  }
 0x5fe   :  { %v1381_v11 = vmax.f32 %v1351_v38, 0.0  ;;  %v2085_v3 = vpop.f32.mrb[88].mxu1  ;;  %v2389_v38 = vld [vmem:[#allocation2 + $0x1f8] sm:$0xff]  }
 0x5ff   :  { %v2086_v48 = vpop.f32.mrb[89].mxu1 }
 0x600   :  { %v2087_v20 = vadd.f32 %v2086_v48, %v2085_v3  ;;  %v2088_v55 = vpop.f32.mrb[90].mxu1  ;;  %v2904_v57 = vpack.c.bf16 %v1381_v11, %v1380_v41  ;;  %v2390_v41 = vld [vmem:[#allocation2 + $0x1b8] sm:$0xff]  }
 0x601   :  { %v2089_v17 = vpop.f32.mrb[91].mxu1 }
 0x602   :  { %v1356_v19 = vadd.f32 %v2087_v20, %v2870_v39  ;;  %v2090_v60 = vadd.f32 %v2089_v17, %v2088_v55  ;;  %2283 = vmatprep.subr.bf16.mxu0 %v2904_v57 }
 0x603   :  { %2284 = vmatpush3.bf16.msra.mxu0 %v2904_v57 }
 0x604   :  { %v1359_v6 = vadd.f32 %v2090_v60, %v2870_v39  ;;  %v1382_v0 = vmax.f32 %v1356_v19, 0.0 }
 0x606   :  { %v1383_v1 = vmax.f32 %v1359_v6, 0.0  ;;  %v2091_v8 = vpop.f32.mrb[92].mxu1 }
 0x607   :  { %v2092_v12 = vpop.f32.mrb[93].mxu1 }
 0x608   :  { %v2093_v15 = vadd.f32 %v2092_v12, %v2091_v8  ;;  %v2094_v13 = vpop.f32.mrb[94].mxu1  ;;  %v2910_v14 = vpack.c.bf16 %v1383_v1, %v1382_v0 }
 0x609   :  { %v2095_v16 = vpop.f32.mrb[95].mxu1 }
 0x60a   :  { %v1364_v21 = vadd.f32 %v2093_v15, %v2870_v39  ;;  %v2096_v46 = vadd.f32 %v2095_v16, %v2094_v13  ;;  %2285 = vmatprep.subr.bf16.mxu0 %v2910_v14 }
 0x60b   :  { %2286 = vmatpush3.bf16.msra.mxu0 %v2910_v14 }
 0x60c   :  { %v1367_v24 = vadd.f32 %v2096_v46, %v2870_v39  ;;  %v1384_v40 = vmax.f32 %v1364_v21, 0.0  ;;  %v2379_v39 = vld [vmem:[#allocation2 + $0x1d0] sm:$0xff]  }
 0x60e   :  { %v1385_v26 = vmax.f32 %v1367_v24, 0.0 }
 0x610   :  { %v2916_v62 = vpack.c.bf16 %v1385_v26, %v1384_v40 }
 0x612   :  { %2287 = vmatprep.subr.bf16.mxu0 %v2916_v62 }
 0x613   :  { %2288 = vmatpush3.bf16.msra.mxu0 %v2916_v62 }
 0x614   :  { %2113 = vmatprep.subr.bf16.mxu0 %v2375_v36 }
 0x616   :  { %2290 = vmatmul.mubr.bf16.vlgmr.msra.gmra.mrb[48].mxu0 %v2819_v7  ;;  %v2384_v7 = vld [vmem:[#allocation2 + $0x1a0] sm:$0xff]  }
 0x617   :  { %2293 = vmatprep.mubr.bf16.mxu0 %v2825_v42  ;;  %2114 = vmatpush3.bf16.msra.mxu0 %v2376_v44  ;;  %v2385_v42 = vld [vmem:[#allocation2 + $0x1e8] sm:$0xff]  }
 0x618   :  { %2115 = vmatprep.subr.bf16.mxu0 %v2377_v28 }
 0x61b   :  { %2116 = vmatpush3.bf16.msra.mxu0 %v2378_v4 }
 0x61c   :  { %2117 = vmatprep.subr.bf16.mxu0 %v2379_v39 }
 0x61e   :  { %2294 = vmatmul.mubr.bf16.gmra.mrb[52].mxu0 %v2831_v5  ;;  %v2386_v5 = vld [vmem:[#allocation2 + $0x1a8] sm:$0xff]  }
 0x61f   :  { %2297 = vmatprep.mubr.bf16.mxu0 %v2837_v61  ;;  %2118 = vmatpush3.bf16.msra.mxu0 %v2380_v27  ;;  %v2397_v61 = vld [vmem:[%s3026_s0 + $0x38] sm:$0xff]  }
 0x620   :  { %2119 = vmatprep.subr.bf16.mxu0 %v2381_v29 }
 0x623   :  { %2120 = vmatpush3.bf16.msra.mxu0 %v2382_v2 }
 0x624   :  { %2121 = vmatprep.subr.bf16.mxu0 %v2383_v31 }
 0x626   :  { %2298 = vmatmul.mubr.bf16.gmra.mrb[56].mxu0 %v2395_v18 }
 0x627   :  { %2301 = vmatprep.mubr.bf16.mxu0 %v2396_v34  ;;  %2122 = vmatpush3.bf16.msra.mxu0 %v2384_v7 }
 0x628   :  { %2123 = vmatprep.subr.bf16.mxu0 %v2385_v42 }
 0x62b   :  { %2124 = vmatpush3.bf16.msra.mxu0 %v2386_v5 }
 0x62c   :  { %2125 = vmatprep.subr.bf16.mxu0 %v2387_v32 }
 0x62e   :  { %2302 = vmatmul.mubr.bf16.gmra.mrb[60].mxu0 %v2397_v61 }
 0x62f   :  { %1684 = vmatprep.mubr.bf16.mxu0 %v2874_v33  ;;  %2126 = vmatpush3.bf16.msra.mxu0 %v2388_v37 }
 0x630   :  { %2127 = vmatprep.subr.bf16.mxu0 %v2389_v38 }
 0x633   :  { %2128 = vmatpush3.bf16.msra.mxu0 %v2390_v41 }
 0x6e9   :  { %v2291_v11 = vpop.f32.mrb[48].mxu0 }
 0x6ea   :  { %v1428_v3 = vpop.f32.mrb[49].mxu0  ;;  %v1493_v20 = vmul.f32 %v2291_v11, %v2624_v50 }
 0x6eb   :  { %v2292_v48 = vpop.f32.mrb[50].mxu0  ;;  %v1491_v19 = vmul.f32 %v1428_v3, %v2622_v49 }
 0x6ec   :  { %v1494_v55 = vmul.f32 %v2292_v48, %v2628_v52  ;;  %v1431_v17 = vpop.f32.mrb[51].mxu0 }
 0x6ed   :  { %v1492_v33 = vmul.f32 %v1431_v17, %v2626_v51 }
 0x6ee   :  { %v1508_v60 = vpack.c.bf16 %v1494_v55, %v1493_v20 }
 0x6ef   :  { %v1507_v6 = vpack.c.bf16 %v1492_v33, %v1491_v19 }
 0x6f1   :  { %v2295_v0 = vpop.f32.mrb[52].mxu0  ;;  %1685 = vmatmul.mubr.bf16.vlgmr.msra.gmra.mrb[64].mxu0 %v1507_v6 }
 0x6f2   :  { %v1444_v1 = vpop.f32.mrb[53].mxu0  ;;  %1692 = vmatprep.mubr.bf16.mxu0 %v2880_v47  ;;  %v1497_v12 = vmul.f32 %v2295_v0, %v2634_v56 }
 0x6f3   :  { %v2296_v8 = vpop.f32.mrb[54].mxu0  ;;  %v1495_v52 = vmul.f32 %v1444_v1, %v2630_v53 }
 0x6f4   :  { %v1498_v15 = vmul.f32 %v2296_v8, %v2636_v58  ;;  %v1447_v50 = vpop.f32.mrb[55].mxu0 }
 0x6f5   :  { %v1496_v13 = vmul.f32 %v1447_v50, %v2632_v54 }
 0x6f6   :  { %v1510_v49 = vpack.c.bf16 %v1498_v15, %v1497_v12 }
 0x6f7   :  { %v1509_v16 = vpack.c.bf16 %v1496_v13, %v1495_v52 }
 0x6f9   :  { %v2299_v51 = vpop.f32.mrb[56].mxu0  ;;  %1693 = vmatmul.mubr.bf16.gmra.mrb[68].mxu0 %v1508_v60 }
 0x6fa   :  { %v1460_v21 = vpop.f32.mrb[57].mxu0  ;;  %1700 = vmatprep.mubr.bf16.mxu0 %v2886_v22  ;;  %v1501_v47 = vmul.f32 %v2299_v51, %v2651_v23 }
 0x6fb   :  { %v2300_v46 = vpop.f32.mrb[58].mxu0  ;;  %v1499_v58 = vmul.f32 %v1460_v21, %v2642_v9 }
 0x6fc   :  { %v1502_v24 = vmul.f32 %v2300_v46, %v2653_v25  ;;  %v1463_v56 = vpop.f32.mrb[59].mxu0 }
 0x6fd   :  { %v1500_v40 = vmul.f32 %v1463_v56, %v2644_v10 }
 0x6fe   :  { %v1512_v53 = vpack.c.bf16 %v1502_v24, %v1501_v47 }
 0x6ff   :  { %v1511_v26 = vpack.c.bf16 %v1500_v40, %v1499_v58 }
 0x701   :  { %v2303_v54 = vpop.f32.mrb[60].mxu0  ;;  %1701 = vmatmul.mubr.bf16.gmra.mrb[72].mxu0 %v1509_v16 }
 0x702   :  { %v1476_v36 = vpop.f32.mrb[61].mxu0  ;;  %1708 = vmatprep.mubr.bf16.mxu0 %v2892_v63  ;;  %v1505_v22 = vmul.f32 %v2303_v54, %v2664_v43 }
 0x703   :  { %v2304_v44 = vpop.f32.mrb[62].mxu0  ;;  %v1503_v25 = vmul.f32 %v1476_v36, %v2656_v30  ;;  %v2960_v30 = vld [vmem:[%s3030_s4 + $0x3] ss:$0 sm:$0xff] }
 0x704   :  { %v1506_v28 = vmul.f32 %v2304_v44, %v2667_v45  ;;  %v1479_v23 = vpop.f32.mrb[63].mxu0 }
 0x705   :  { %v1504_v4 = vmul.f32 %v1479_v23, %v2660_v35 }
 0x706   :  { %v1514_v9 = vpack.c.bf16 %v1506_v28, %v1505_v22 }
 0x707   :  { %v1513_v39 = vpack.c.bf16 %v1504_v4, %v1503_v25 }
 0x709   :  { %1709 = vmatmul.mubr.bf16.gmra.mrb[76].mxu0 %v1510_v49 }
 0x70a   :  { %1716 = vmatprep.mubr.bf16.mxu0 %v2898_v59 }
 0x711   :  { %1717 = vmatmul.mubr.bf16.gmra.mrb[80].mxu0 %v1511_v26 }
 0x712   :  { %1724 = vmatprep.mubr.bf16.mxu0 %v2904_v57 }
 0x719   :  { %1725 = vmatmul.mubr.bf16.gmra.mrb[84].mxu0 %v1512_v53 }
 0x71a   :  { %1732 = vmatprep.mubr.bf16.mxu0 %v2910_v14 }
 0x721   :  { %1733 = vmatmul.mubr.bf16.gmra.mrb[88].mxu0 %v1513_v39 }
 0x722   :  { %1740 = vmatprep.mubr.bf16.mxu0 %v2916_v62 }
 0x729   :  { %1741 = vmatmul.mubr.bf16.gmra.mrb[92].mxu0 %v1514_v9 }
 0x7c4   :  { %v2129_v10 = vpop.f32.mrb[64].mxu0 }
 0x7c5   :  { %v2130_v35 = vpop.f32.mrb[65].mxu0 }
 0x7c6   :  { %v2131_v43 = vadd.f32 %v2130_v35, %v2129_v10  ;;  %v2132_v45 = vpop.f32.mrb[66].mxu0 }
 0x7c7   :  { %v2133_v63 = vpop.f32.mrb[67].mxu0 }
 0x7c8   :  { %v1687_v59 = vadd.f32 %v2131_v43, %v2960_v30  ;;  %v2134_v57 = vadd.f32 %v2133_v63, %v2132_v45 }
 0x7ca   :  { %1749 = vst [vmem:[%s3031_s5] sm:$0xff] %v1687_v59  ;;  %v1690_v14 = vadd.f32 %v2134_v57, %v2960_v30 }
 0x7cc   :  { %1750 = vst [vmem:[%s3031_s5 + $0x8] sm:$0xff] %v1690_v14  ;;  %v2135_v62 = vpop.f32.mrb[68].mxu0 }
 0x7cd   :  { %v2136_v27 = vpop.f32.mrb[69].mxu0 }
 0x7ce   :  { %v2137_v29 = vadd.f32 %v2136_v27, %v2135_v62  ;;  %v2138_v2 = vpop.f32.mrb[70].mxu0 }
 0x7cf   :  { %v2139_v31 = vpop.f32.mrb[71].mxu0 }
 0x7d0   :  { %v1695_v7 = vadd.f32 %v2137_v29, %v2960_v30  ;;  %v2140_v42 = vadd.f32 %v2139_v31, %v2138_v2 }
 0x7d2   :  { %1751 = vst [vmem:[%s3031_s5 + $0x10] sm:$0xff] %v1695_v7  ;;  %v1698_v18 = vadd.f32 %v2140_v42, %v2960_v30 }
 0x7d4   :  { %1752 = vst [vmem:[%s3031_s5 + $0x18] sm:$0xff] %v1698_v18  ;;  %v2141_v34 = vpop.f32.mrb[72].mxu0 }
 0x7d5   :  { %v2142_v5 = vpop.f32.mrb[73].mxu0 }
 0x7d6   :  { %v2143_v61 = vadd.f32 %v2142_v5, %v2141_v34  ;;  %v2144_v32 = vpop.f32.mrb[74].mxu0 }
 0x7d7   :  { %v2145_v37 = vpop.f32.mrb[75].mxu0 }
 0x7d8   :  { %v1703_v38 = vadd.f32 %v2143_v61, %v2960_v30  ;;  %v2146_v41 = vadd.f32 %v2145_v37, %v2144_v32 }
 0x7da   :  { %1753 = vst [vmem:[%s3031_s5 + $0x20] sm:$0xff] %v1703_v38  ;;  %v1706_v11 = vadd.f32 %v2146_v41, %v2960_v30 }
 0x7dc   :  { %1754 = vst [vmem:[%s3031_s5 + $0x28] sm:$0xff] %v1706_v11  ;;  %v2147_v3 = vpop.f32.mrb[76].mxu0 }
 0x7dd   :  { %v2148_v48 = vpop.f32.mrb[77].mxu0 }
 0x7de   :  { %v2149_v20 = vadd.f32 %v2148_v48, %v2147_v3  ;;  %v2150_v55 = vpop.f32.mrb[78].mxu0 }
 0x7df   :  { %v2151_v17 = vpop.f32.mrb[79].mxu0 }
 0x7e0   :  { %v1711_v19 = vadd.f32 %v2149_v20, %v2960_v30  ;;  %v2152_v33 = vadd.f32 %v2151_v17, %v2150_v55 }
 0x7e2   :  { %1755 = vst [vmem:[%s3031_s5 + $0x30] sm:$0xff] %v1711_v19  ;;  %v1714_v60 = vadd.f32 %v2152_v33, %v2960_v30 }
 0x7e4   :  { %1756 = vst [vmem:[%s3031_s5 + $0x38] sm:$0xff] %v1714_v60  ;;  %v2153_v6 = vpop.f32.mrb[80].mxu0 }
 0x7e5   :  { %v2154_v0 = vpop.f32.mrb[81].mxu0 }
 0x7e6   :  { %v2155_v1 = vadd.f32 %v2154_v0, %v2153_v6  ;;  %v2156_v8 = vpop.f32.mrb[82].mxu0 }
 0x7e7   :  { %v2157_v12 = vpop.f32.mrb[83].mxu0 }
 0x7e8   :  { %v1719_v15 = vadd.f32 %v2155_v1, %v2960_v30  ;;  %v2158_v50 = vadd.f32 %v2157_v12, %v2156_v8 }
 0x7ea   :  { %1757 = vst [vmem:[%s3031_s5 + $0x40] sm:$0xff] %v1719_v15  ;;  %v1722_v52 = vadd.f32 %v2158_v50, %v2960_v30 }
 0x7ec   :  { %1758 = vst [vmem:[%s3031_s5 + $0x48] sm:$0xff] %v1722_v52  ;;  %v2159_v13 = vpop.f32.mrb[84].mxu0 }
 0x7ed   :  { %v2160_v49 = vpop.f32.mrb[85].mxu0 }
 0x7ee   :  { %v2161_v16 = vadd.f32 %v2160_v49, %v2159_v13  ;;  %v2162_v51 = vpop.f32.mrb[86].mxu0 }
 0x7ef   :  { %v2163_v21 = vpop.f32.mrb[87].mxu0 }
 0x7f0   :  { %v1727_v46 = vadd.f32 %v2161_v16, %v2960_v30  ;;  %v2164_v47 = vadd.f32 %v2163_v21, %v2162_v51 }
 0x7f2   :  { %1759 = vst [vmem:[%s3031_s5 + $0x50] sm:$0xff] %v1727_v46  ;;  %v1730_v24 = vadd.f32 %v2164_v47, %v2960_v30 }
 0x7f4   :  { %1760 = vst [vmem:[%s3031_s5 + $0x58] sm:$0xff] %v1730_v24  ;;  %v2165_v56 = vpop.f32.mrb[88].mxu0 }
 0x7f5   :  { %v2166_v58 = vpop.f32.mrb[89].mxu0 }
 0x7f6   :  { %v2167_v40 = vadd.f32 %v2166_v58, %v2165_v56  ;;  %v2168_v53 = vpop.f32.mrb[90].mxu0 }
 0x7f7   :  { %v2169_v26 = vpop.f32.mrb[91].mxu0 }
 0x7f8   :  { %v1735_v54 = vadd.f32 %v2167_v40, %v2960_v30  ;;  %v2170_v36 = vadd.f32 %v2169_v26, %v2168_v53 }
 0x7fa   :  { %1761 = vst [vmem:[%s3031_s5 + $0x60] sm:$0xff] %v1735_v54  ;;  %v1738_v44 = vadd.f32 %v2170_v36, %v2960_v30 }
 0x7fc   :  { %1762 = vst [vmem:[%s3031_s5 + $0x68] sm:$0xff] %v1738_v44  ;;  %v2171_v22 = vpop.f32.mrb[92].mxu0 }
 0x7fd   :  { %v2172_v28 = vpop.f32.mrb[93].mxu0 }
 0x7fe   :  { %v2173_v23 = vadd.f32 %v2172_v28, %v2171_v22  ;;  %v2174_v25 = vpop.f32.mrb[94].mxu0 }
 0x7ff   :  { %v2175_v4 = vpop.f32.mrb[95].mxu0 }
 0x800   :  { %v1743_v9 = vadd.f32 %v2173_v23, %v2960_v30  ;;  %v2176_v39 = vadd.f32 %v2175_v4, %v2174_v25 }
 0x802   :  { %1763 = vst [vmem:[%s3031_s5 + $0x70] sm:$0xff] %v1743_v9  ;;  %v1746_v10 = vadd.f32 %v2176_v39, %v2960_v30 }
 0x804   :  { %1764 = vst [vmem:[%s3031_s5 + $0x78] sm:$0xff] %v1746_v10 }
 0x805   :  { %1769 = vsyncpa [#allocation3], 1 }

</bundles_post_ra>
